<compile_context>
chip_gen: v6e
topology: v6e:2x2x1
jax: 0.10.0
libtpu: 0.0.40
codegen_flags: <defaults>
</compile_context>

<pallas_src>
import math

import jax
import jax.numpy as jnp
from jax.experimental import pallas as pl
from jax.experimental.pallas import tpu as pltpu


_SQRT1_2 = 1.0 / math.sqrt(2.0)


def _gelu_exact(x):
    # PyTorch nn.GELU() default = exact erf-based GELU.
    # TODO(synk): on v5e (no EUP path for erf) a tanh-approx GELU would move
    # this off the VALU; kept exact to match the PyTorch reference numerics.
    return 0.5 * x * (1.0 + jax.lax.erf(x * _SQRT1_2))


def predictor_kernel(x_ref, w1t_ref, b1_ref, qp_ref, qt_ref, w2t_ref, b2_ref,
                     w3t_ref, b3_ref, w4d_ref, db_ref, o_ref):
    """Single-step fused forward on a channel-major (C, B*N) slab."""
    B, C, N = x_ref.shape
    half = C // 2

    # Fold batch into the lane axis: concat per-batch (C, N) slices -> (C, B*N).
    # Each piece is a multiple of 128 lanes, so this is tile-aligned copies.
    if B > 1:
        x = jnp.concatenate([x_ref[b] for b in range(B)], axis=-1)
    else:
        x = x_ref[0]

    # ---- LayerNorm over channels (affine folded into W1 / b1') ----
    mu = jnp.mean(x, axis=0, keepdims=True)              # (1, B*N)
    xc = x - mu
    var = jnp.mean(xc * xc, axis=0, keepdims=True)
    xn = xc * jax.lax.rsqrt(var + 1e-5)                  # (C, B*N)

    # ---- in_conv Linear + GELU (gamma folded into W1, beta@W1+b1 folded) ----
    h1 = jnp.dot(w1t_ref[...], xn.astype(jnp.bfloat16),
                 preferred_element_type=jnp.float32) + b1_ref[...]
    h1 = _gelu_exact(h1)                                 # (C, B*N) f32
    h1b = h1.astype(jnp.bfloat16)

    local = h1b[:half, :]                                # (C/2, B*N) bf16
    glob = h1b[half:, :]                                 # (C/2, B*N) bf16

    # adaptive_avg_pool2d(2,2) + nearest == block-diag quadrant mean (bf16 in,
    # f32 accumulate) followed by a one-hot broadcast back to every token.
    pooled = jnp.dot(glob, qp_ref[...],
                     preferred_element_type=jnp.float32)          # (C/2, 4B)
    gbcast = jnp.dot(pooled, qt_ref[...],
                     preferred_element_type=jnp.float32)          # (C/2, B*N)

    # ---- out_conv layer 1: one fat K=C dot on [local ; global_bcast] ----
    z = jnp.concatenate([local, gbcast.astype(jnp.bfloat16)], axis=0)   # (C, B*N)
    h2 = _gelu_exact(jnp.dot(w2t_ref[...], z,
                             preferred_element_type=jnp.float32) + b2_ref[...])

    # ---- out_conv layer 2 ----
    h3 = _gelu_exact(jnp.dot(w3t_ref[...], h2.astype(jnp.bfloat16),
                             preferred_element_type=jnp.float32) + b3_ref[...])

    # ---- 2-class head: one difference reduce + one (stable) softplus ----
    d = jnp.sum(h3 * w4d_ref[...], axis=0, keepdims=True) + db_ref[...]  # (1, B*N)
    sp = jnp.maximum(d, 0.0) + jnp.log(1.0 + jnp.exp(-jnp.abs(d)))       # softplus(d)
    o0 = -sp                 # log_softmax class 0 = -softplus(d)
    o1 = d - sp              # log_softmax class 1 = -softplus(-d)

    # Lane-dense row stores, split back per batch (lane offsets are multiples of N).
    for b in range(B):
        o_ref[b, 0:1, :] = o0[:, b * N:(b + 1) * N]
        o_ref[b, 1:2, :] = o1[:, b * N:(b + 1) * N]


def init_params(key, embed_dim):
    C = embed_dim
    ks = jax.random.split(key, 10)
    scale = 0.02
    return {
        # Non-trivial LN affine so the gamma/beta -> W1/b1 fold is exercised.
        "gamma": 1.0 + 0.1 * jax.random.normal(ks[8], (1, C), jnp.float32),
        "beta": 0.1 * jax.random.normal(ks[9], (1, C), jnp.float32),
        "w1": scale * jax.random.normal(ks[0], (C, C), jnp.float32),
        "b1": scale * jax.random.normal(ks[1], (1, C), jnp.float32),
        "w2": scale * jax.random.normal(ks[2], (C, C // 2), jnp.float32),
        "b2": scale * jax.random.normal(ks[3], (1, C // 2), jnp.float32),
        "w3": scale * jax.random.normal(ks[4], (C // 2, C // 4), jnp.float32),
        "b3": scale * jax.random.normal(ks[5], (1, C // 4), jnp.float32),
        "w4": scale * jax.random.normal(ks[6], (C // 4, 2), jnp.float32),
        "b4": scale * jax.random.normal(ks[7], (1, 2), jnp.float32),
    }


def prepare_params(params, B, H, W):
    """Call-invariant weight prep (hoisted out of the per-forward path)."""
    C = params["w1"].shape[0]
    half, quart = C // 2, C // 4
    N = H * W

    # Fold LayerNorm affine + b1 into the first Linear.
    w1p = params["gamma"].reshape(C, 1) * params["w1"]                    # (C, C)
    b1p = (params["beta"].reshape(1, C) @ params["w1"]
           + params["b1"]).reshape(C, 1)                                  # (C, 1)

    # Fold the 2-class projection into a single difference vector / scalar.
    w4d = (params["w4"][:, 1] - params["w4"][:, 0]).reshape(quart, 1)
    db = (params["b4"].reshape(2)[1] - params["b4"].reshape(2)[0]).reshape(1, 1)

    # Block-diagonal quadrant-mean / broadcast one-hots on the folded B*N axis.
    n = jnp.arange(N)
    q = (n // W >= H // 2).astype(jnp.int32) * 2 + (n % W >= W // 2).astype(jnp.int32)
    qb = (jnp.arange(B)[:, None] * 4 + q[None, :]).reshape(B * N)         # (B*N,)
    onehot = (qb[:, None] == jnp.arange(4 * B)[None, :]).astype(jnp.float32)
    qp = (onehot * (4.0 / float(N))).astype(jnp.bfloat16)                 # (B*N, 4B)
    qt = onehot.T                                                         # (4B, B*N)

    return {
        "w1t": w1p.T.astype(jnp.bfloat16),                  # (C, C)
        "b1": b1p.astype(jnp.float32),                      # (C, 1)
        "qp": qp,
        "qt": qt,
        "w2t": params["w2"].T.astype(jnp.bfloat16),         # (C/2, C)
        "b2": params["b2"].reshape(half, 1).astype(jnp.float32),
        "w3t": params["w3"].T.astype(jnp.bfloat16),         # (C/4, C/2)
        "b3": params["b3"].reshape(quart, 1).astype(jnp.float32),
        "w4d": w4d.astype(jnp.float32),
        "db": db.astype(jnp.float32),
    }


def _const_spec(shape, single_buffer):
    ndim = len(shape)
    idx = lambda i, _n=ndim: (0,) * _n
    if single_buffer:
        # Constant-index blocks never change across the grid -> single buffer.
        return pl.BlockSpec(shape, idx, pipeline_mode=pl.Buffered(1))
    return pl.BlockSpec(shape, idx)


def _run_pallas(x_bcn, prep, single_buffer_weights):
    B, C, N = x_bcn.shape
    half, quart = C // 2, C // 4

    # VMEM budget: block DMAs, resident weights, and a generous allowance for
    # in-kernel f32/bf16 intermediates; clamped to physical VMEM minus headroom
    # (64 MiB on v7x, 128 MiB on v5e/v6e).
    wgt_bytes = (2 * (C * C + half * C + quart * half)          # bf16 matmul weights
                 + 4 * (C + half + quart + quart + 1)           # f32 biases / head
                 + 2 * B * N * 4 * B + 4 * 4 * B * B * N)       # qp (bf16) + qt (f32)
    io_bytes = 2 * (4 * B * C * N) + 2 * (4 * B * 2 * N)        # x / out blocks
    act_bytes = 12 * 4 * C * B * N                              # slab intermediates
    need = io_bytes + 2 * wgt_bytes + act_bytes + (2 << 20)
    try:
        cap = pltpu.get_tpu_info().vmem_capacity_bytes
    except Exception:
        cap = 64 << 20                                          # v7x-conservative
    vmem_limit = int(min(cap - (4 << 20), max(need, 16 << 20)))

    sb = single_buffer_weights
    return pl.pallas_call(
        predictor_kernel,
        out_shape=jax.ShapeDtypeStruct((B, 2, N), jnp.float32),
        grid=(1,),
        in_specs=[
            pl.BlockSpec((B, C, N), lambda i: (0, 0, 0)),       # x (channel-major)
            _const_spec((C, C), sb),                            # w1^T (bf16, gamma-folded)
            _const_spec((C, 1), sb),                            # b1'  (f32, beta-folded)
            _const_spec((B * N, 4 * B), sb),                    # quadrant-mean weights
            _const_spec((4 * B, B * N), sb),                    # quadrant broadcast
            _const_spec((half, C), sb),                         # w2^T (bf16)
            _const_spec((half, 1), sb),                         # b2
            _const_spec((quart, half), sb),                     # w3^T (bf16)
            _const_spec((quart, 1), sb),                        # b3
            _const_spec((quart, 1), sb),                        # w4 class-diff (f32)
            _const_spec((1, 1), sb),                            # b4 class-diff (f32)
        ],
        out_specs=pl.BlockSpec((B, 2, N), lambda i: (0, 0, 0)),
        compiler_params=pltpu.CompilerParams(
            dimension_semantics=("arbitrary",),
            vmem_limit_bytes=vmem_limit),
    )(x_bcn, prep["w1t"], prep["b1"], prep["qp"], prep["qt"], prep["w2t"],
      prep["b2"], prep["w3t"], prep["b3"], prep["w4d"], prep["db"])


def predictor_forward(x_nchw, prep):
    B, C, H, W = x_nchw.shape
    assert H == W, "module semantics require square spatial dims"
    assert H % 2 == 0, \
        "adaptive_avg_pool2d(2,2)+nearest only matches PyTorch for even dims"
    assert C % 4 == 0
    N = H * W
    assert prep["qt"].shape == (4 * B, B * N), \
        "prepared params were built for a different (B, H, W)"

    x_bcn = x_nchw.reshape(B, C, N)        # NCHW -> channel-major: free reshape
    try:
        out = jax.block_until_ready(_run_pallas(x_bcn, prep, True))
    except Exception:
        # pl.Buffered(1) pipeline_mode unsupported on this build -> retry with
        # default double-buffered constant blocks.
        out = _run_pallas(x_bcn, prep, False)
    # (B, 2, N) is already the flattened (B, 2, H, W): free reshape, no transpose.
    return out.reshape(B, 2, H, W)


def predictor_reference(x_nchw, params):
    """Pure-JAX reference mirroring the PyTorch module (f32 math)."""
    B, C, H, W = x_nchw.shape
    N = H * W
    half = C // 2
    x = x_nchw.reshape(B, C, N).transpose(0, 2, 1)            # (B, N, C)
    mu = x.mean(-1, keepdims=True)
    var = ((x - mu) ** 2).mean(-1, keepdims=True)
    xn = (x - mu) / jnp.sqrt(var + 1e-5) * params["gamma"] + params["beta"]
    h1 = _gelu_exact(xn @ params["w1"] + params["b1"])
    local = h1[..., :half]
    glob = h1[..., half:].reshape(B, 2, H // 2, 2, W // 2, half)
    qmean = glob.mean(axis=(2, 4))                            # (B, 2, 2, C/2)
    up = jnp.repeat(jnp.repeat(qmean, H // 2, axis=1), W // 2, axis=2)
    z = jnp.concatenate([local, up.reshape(B, N, half)], axis=-1)
    h2 = _gelu_exact(z @ params["w2"] + params["b2"])
    h3 = _gelu_exact(h2 @ params["w3"] + params["b3"])
    logits = h3 @ params["w4"] + params["b4"]
    out = jax.nn.log_softmax(logits, axis=-1)
    return out.transpose(0, 2, 1).reshape(B, 2, H, W)


if __name__ == "__main__":
    key = jax.random.PRNGKey(0)
    k_x, k_p = jax.random.split(key)

    B, C, H, W = 2, 32, 16, 16        # embed_dim=32, B*N=512 lane-dense tokens
    x = jax.random.normal(k_x, (B, C, H, W), jnp.float32)
    params = init_params(k_p, C)
    prep = prepare_params(params, B, H, W)     # hoisted, call-invariant prep

    out = predictor_forward(x, prep)
    jax.block_until_ready(out)
    assert out.shape == (B, 2, H, W)

    ref = predictor_reference(x, params)
    max_err = float(jnp.max(jnp.abs(out - ref)))
    assert jnp.allclose(out, ref, atol=2e-2, rtol=2e-2), max_err
    print("KERNEL_OK")
</pallas_src>

<mosaic_0001>
module attributes {stable_mosaic.version = 11 : i64} {
  func.func @predictor_kernel(%arg0: i32, %arg1: memref<2x32x256xf32, #tpu.memory_space<vmem>>, %arg2: memref<32x32xbf16, #tpu.memory_space<vmem>>, %arg3: memref<32x1xf32, #tpu.memory_space<vmem>>, %arg4: memref<512x8xbf16, #tpu.memory_space<vmem>>, %arg5: memref<8x512xf32, #tpu.memory_space<vmem>>, %arg6: memref<16x32xbf16, #tpu.memory_space<vmem>>, %arg7: memref<16x1xf32, #tpu.memory_space<vmem>>, %arg8: memref<8x16xbf16, #tpu.memory_space<vmem>>, %arg9: memref<8x1xf32, #tpu.memory_space<vmem>>, %arg10: memref<8x1xf32, #tpu.memory_space<vmem>>, %arg11: memref<1x1xf32, #tpu.memory_space<vmem>>, %arg12: memref<2x2x256xf32, #tpu.memory_space<vmem>>) attributes {dimension_semantics = [#tpu.dimension_semantics<arbitrary>], iteration_bounds = array<i64: 1>, scalar_prefetch = 0 : i64, scratch_operands = 0 : i64, tpu.core_type = #tpu.core_type<tc>, window_params = [{pipeline_mode = #tpu.pipeline_mode<synchronous>, transform_indices = @transform_0, window_bounds = array<i64: 2, 32, 256>}, {pipeline_mode = #tpu.pipeline_mode<synchronous>, transform_indices = @transform_1, window_bounds = array<i64: 32, 32>}, {pipeline_mode = #tpu.pipeline_mode<synchronous>, transform_indices = @transform_2, window_bounds = array<i64: 32, 1>}, {pipeline_mode = #tpu.pipeline_mode<synchronous>, transform_indices = @transform_3, window_bounds = array<i64: 512, 8>}, {pipeline_mode = #tpu.pipeline_mode<synchronous>, transform_indices = @transform_4, window_bounds = array<i64: 8, 512>}, {pipeline_mode = #tpu.pipeline_mode<synchronous>, transform_indices = @transform_5, window_bounds = array<i64: 16, 32>}, {pipeline_mode = #tpu.pipeline_mode<synchronous>, transform_indices = @transform_6, window_bounds = array<i64: 16, 1>}, {pipeline_mode = #tpu.pipeline_mode<synchronous>, transform_indices = @transform_7, window_bounds = array<i64: 8, 16>}, {pipeline_mode = #tpu.pipeline_mode<synchronous>, transform_indices = @transform_8, window_bounds = array<i64: 8, 1>}, {pipeline_mode = #tpu.pipeline_mode<synchronous>, transform_indices = @transform_9, window_bounds = array<i64: 8, 1>}, {pipeline_mode = #tpu.pipeline_mode<synchronous>, transform_indices = @transform_10, window_bounds = array<i64: 1, 1>}, {pipeline_mode = #tpu.pipeline_mode<synchronous>, transform_indices = @transform_11, window_bounds = array<i64: 2, 2, 256>}]} {
    %c0 = arith.constant 0 : index
    %c0_0 = arith.constant 0 : index
    %c0_1 = arith.constant 0 : index
    %0 = vector.load %arg1[%c0, %c0_0, %c0_1] : memref<2x32x256xf32, #tpu.memory_space<vmem>>, vector<1x32x256xf32>
    %1 = vector.shape_cast %0 : vector<1x32x256xf32> to vector<32x256xf32>
    %c1 = arith.constant 1 : index
    %c0_2 = arith.constant 0 : index
    %c0_3 = arith.constant 0 : index
    %2 = vector.load %arg1[%c1, %c0_2, %c0_3] : memref<2x32x256xf32, #tpu.memory_space<vmem>>, vector<1x32x256xf32>
    %3 = vector.shape_cast %2 : vector<1x32x256xf32> to vector<32x256xf32>
    %4 = tpu.concatenate %1, %3 in 1 : vector<32x256xf32>, vector<32x256xf32> -> vector<32x512xf32>
    %cst = arith.constant dense<0.000000e+00> : vector<512xf32>
    %5 = vector.multi_reduction <add>, %4, %cst [0] : vector<32x512xf32> to vector<512xf32>
    %6 = vector.shape_cast %5 : vector<512xf32> to vector<1x512xf32>
    %cst_4 = arith.constant 3.200000e+01 : f32
    %7 = vector.broadcast %cst_4 : f32 to vector<1x512xf32>
    %8 = arith.divf %6, %7 : vector<1x512xf32>
    %9 = vector.broadcast %8 : vector<1x512xf32> to vector<32x512xf32>
    %10 = arith.subf %4, %9 : vector<32x512xf32>
    %11 = arith.mulf %10, %10 : vector<32x512xf32>
    %cst_5 = arith.constant dense<0.000000e+00> : vector<512xf32>
    %12 = vector.multi_reduction <add>, %11, %cst_5 [0] : vector<32x512xf32> to vector<512xf32>
    %13 = vector.shape_cast %12 : vector<512xf32> to vector<1x512xf32>
    %cst_6 = arith.constant 3.200000e+01 : f32
    %14 = vector.broadcast %cst_6 : f32 to vector<1x512xf32>
    %15 = arith.divf %13, %14 : vector<1x512xf32>
    %cst_7 = arith.constant 9.99999974E-6 : f32
    %16 = vector.broadcast %cst_7 : f32 to vector<1x512xf32>
    %17 = arith.addf %15, %16 : vector<1x512xf32>
    %18 = math.rsqrt %17 : vector<1x512xf32>
    %19 = vector.broadcast %18 : vector<1x512xf32> to vector<32x512xf32>
    %20 = arith.mulf %10, %19 : vector<32x512xf32>
    %c0_8 = arith.constant 0 : index
    %c0_9 = arith.constant 0 : index
    %21 = vector.load %arg2[%c0_8, %c0_9] : memref<32x32xbf16, #tpu.memory_space<vmem>>, vector<32x32xbf16>
    %22 = arith.truncf %20 : vector<32x512xf32> to vector<32x512xbf16>
    %cst_10 = arith.constant dense<0.000000e+00> : vector<32x512xf32>
    %23 = tpu.matmul %21, %22, %cst_10 {dimension_numbers = #tpu.dot_dimension_numbers<[1], [0], [0], [1], [0, 0, 1, 1], [], []>} : vector<32x32xbf16>, vector<32x512xbf16>, vector<32x512xf32> -> vector<32x512xf32>
    %c0_11 = arith.constant 0 : index
    %c0_12 = arith.constant 0 : index
    %24 = vector.load %arg3[%c0_11, %c0_12] : memref<32x1xf32, #tpu.memory_space<vmem>>, vector<32x1xf32>
    %25 = vector.broadcast %24 : vector<32x1xf32> to vector<32x512xf32>
    %26 = arith.addf %23, %25 : vector<32x512xf32>
    %cst_13 = arith.constant 5.000000e-01 : f32
    %27 = vector.broadcast %cst_13 : f32 to vector<32x512xf32>
    %28 = arith.mulf %27, %26 : vector<32x512xf32>
    %cst_14 = arith.constant 0.707106769 : f32
    %29 = vector.broadcast %cst_14 : f32 to vector<32x512xf32>
    %30 = arith.mulf %26, %29 : vector<32x512xf32>
    %31 = math.erf %30 : vector<32x512xf32>
    %cst_15 = arith.constant 1.000000e+00 : f32
    %32 = vector.broadcast %cst_15 : f32 to vector<32x512xf32>
    %33 = arith.addf %32, %31 : vector<32x512xf32>
    %34 = arith.mulf %28, %33 : vector<32x512xf32>
    %35 = arith.truncf %34 : vector<32x512xf32> to vector<32x512xbf16>
    %36 = vector.extract_strided_slice %35 {offsets = [0, 0], sizes = [16, 512], strides = [1, 1]} : vector<32x512xbf16> to vector<16x512xbf16>
    %37 = vector.extract_strided_slice %35 {offsets = [16, 0], sizes = [16, 512], strides = [1, 1]} : vector<32x512xbf16> to vector<16x512xbf16>
    %c0_16 = arith.constant 0 : index
    %c0_17 = arith.constant 0 : index
    %38 = vector.load %arg4[%c0_16, %c0_17] : memref<512x8xbf16, #tpu.memory_space<vmem>>, vector<512x8xbf16>
    %cst_18 = arith.constant dense<0.000000e+00> : vector<16x8xf32>
    %39 = tpu.matmul %37, %38, %cst_18 {dimension_numbers = #tpu.dot_dimension_numbers<[1], [0], [0], [1], [0, 0, 1, 1], [], []>} : vector<16x512xbf16>, vector<512x8xbf16>, vector<16x8xf32> -> vector<16x8xf32>
    %c0_19 = arith.constant 0 : index
    %c0_20 = arith.constant 0 : index
    %40 = vector.load %arg5[%c0_19, %c0_20] : memref<8x512xf32, #tpu.memory_space<vmem>>, vector<8x512xf32>
    %cst_21 = arith.constant dense<0.000000e+00> : vector<16x512xf32>
    %41 = tpu.matmul %39, %40, %cst_21 {dimension_numbers = #tpu.dot_dimension_numbers<[1], [0], [0], [1], [0, 0, 1, 1], [], []>} : vector<16x8xf32>, vector<8x512xf32>, vector<16x512xf32> -> vector<16x512xf32>
    %42 = arith.truncf %41 : vector<16x512xf32> to vector<16x512xbf16>
    %43 = tpu.concatenate %36, %42 in 0 : vector<16x512xbf16>, vector<16x512xbf16> -> vector<32x512xbf16>
    %c0_22 = arith.constant 0 : index
    %c0_23 = arith.constant 0 : index
    %44 = vector.load %arg6[%c0_22, %c0_23] : memref<16x32xbf16, #tpu.memory_space<vmem>>, vector<16x32xbf16>
    %cst_24 = arith.constant dense<0.000000e+00> : vector<16x512xf32>
    %45 = tpu.matmul %44, %43, %cst_24 {dimension_numbers = #tpu.dot_dimension_numbers<[1], [0], [0], [1], [0, 0, 1, 1], [], []>} : vector<16x32xbf16>, vector<32x512xbf16>, vector<16x512xf32> -> vector<16x512xf32>
    %c0_25 = arith.constant 0 : index
    %c0_26 = arith.constant 0 : index
    %46 = vector.load %arg7[%c0_25, %c0_26] : memref<16x1xf32, #tpu.memory_space<vmem>>, vector<16x1xf32>
    %47 = vector.broadcast %46 : vector<16x1xf32> to vector<16x512xf32>
    %48 = arith.addf %45, %47 : vector<16x512xf32>
    %cst_27 = arith.constant 5.000000e-01 : f32
    %49 = vector.broadcast %cst_27 : f32 to vector<16x512xf32>
    %50 = arith.mulf %49, %48 : vector<16x512xf32>
    %cst_28 = arith.constant 0.707106769 : f32
    %51 = vector.broadcast %cst_28 : f32 to vector<16x512xf32>
    %52 = arith.mulf %48, %51 : vector<16x512xf32>
    %53 = math.erf %52 : vector<16x512xf32>
    %cst_29 = arith.constant 1.000000e+00 : f32
    %54 = vector.broadcast %cst_29 : f32 to vector<16x512xf32>
    %55 = arith.addf %54, %53 : vector<16x512xf32>
    %56 = arith.mulf %50, %55 : vector<16x512xf32>
    %c0_30 = arith.constant 0 : index
    %c0_31 = arith.constant 0 : index
    %57 = vector.load %arg8[%c0_30, %c0_31] : memref<8x16xbf16, #tpu.memory_space<vmem>>, vector<8x16xbf16>
    %58 = arith.truncf %56 : vector<16x512xf32> to vector<16x512xbf16>
    %cst_32 = arith.constant dense<0.000000e+00> : vector<8x512xf32>
    %59 = tpu.matmul %57, %58, %cst_32 {dimension_numbers = #tpu.dot_dimension_numbers<[1], [0], [0], [1], [0, 0, 1, 1], [], []>} : vector<8x16xbf16>, vector<16x512xbf16>, vector<8x512xf32> -> vector<8x512xf32>
    %c0_33 = arith.constant 0 : index
    %c0_34 = arith.constant 0 : index
    %60 = vector.load %arg9[%c0_33, %c0_34] : memref<8x1xf32, #tpu.memory_space<vmem>>, vector<8x1xf32>
    %61 = vector.broadcast %60 : vector<8x1xf32> to vector<8x512xf32>
    %62 = arith.addf %59, %61 : vector<8x512xf32>
    %cst_35 = arith.constant 5.000000e-01 : f32
    %63 = vector.broadcast %cst_35 : f32 to vector<8x512xf32>
    %64 = arith.mulf %63, %62 : vector<8x512xf32>
    %cst_36 = arith.constant 0.707106769 : f32
    %65 = vector.broadcast %cst_36 : f32 to vector<8x512xf32>
    %66 = arith.mulf %62, %65 : vector<8x512xf32>
    %67 = math.erf %66 : vector<8x512xf32>
    %cst_37 = arith.constant 1.000000e+00 : f32
    %68 = vector.broadcast %cst_37 : f32 to vector<8x512xf32>
    %69 = arith.addf %68, %67 : vector<8x512xf32>
    %70 = arith.mulf %64, %69 : vector<8x512xf32>
    %c0_38 = arith.constant 0 : index
    %c0_39 = arith.constant 0 : index
    %71 = vector.load %arg10[%c0_38, %c0_39] : memref<8x1xf32, #tpu.memory_space<vmem>>, vector<8x1xf32>
    %72 = vector.broadcast %71 : vector<8x1xf32> to vector<8x512xf32>
    %73 = arith.mulf %70, %72 : vector<8x512xf32>
    %cst_40 = arith.constant dense<0.000000e+00> : vector<512xf32>
    %74 = vector.multi_reduction <add>, %73, %cst_40 [0] : vector<8x512xf32> to vector<512xf32>
    %75 = vector.shape_cast %74 : vector<512xf32> to vector<1x512xf32>
    %c0_41 = arith.constant 0 : index
    %c0_42 = arith.constant 0 : index
    %76 = vector.load %arg11[%c0_41, %c0_42] : memref<1x1xf32, #tpu.memory_space<vmem>>, vector<1x1xf32>
    %77 = vector.broadcast %76 : vector<1x1xf32> to vector<1x512xf32>
    %78 = arith.addf %75, %77 : vector<1x512xf32>
    %cst_43 = arith.constant 0.000000e+00 : f32
    %79 = vector.broadcast %cst_43 : f32 to vector<1x512xf32>
    %80 = arith.maximumf %78, %79 : vector<1x512xf32>
    %81 = math.absf %78 : vector<1x512xf32>
    %cst_44 = arith.constant 0.000000e+00 : f32
    %82 = vector.broadcast %cst_44 : f32 to vector<1x512xf32>
    %83 = arith.subf %82, %81 : vector<1x512xf32>
    %84 = math.exp %83 : vector<1x512xf32>
    %cst_45 = arith.constant 1.000000e+00 : f32
    %85 = vector.broadcast %cst_45 : f32 to vector<1x512xf32>
    %86 = arith.addf %85, %84 : vector<1x512xf32>
    %87 = math.log %86 : vector<1x512xf32>
    %88 = arith.addf %80, %87 : vector<1x512xf32>
    %cst_46 = arith.constant 0.000000e+00 : f32
    %89 = vector.broadcast %cst_46 : f32 to vector<1x512xf32>
    %90 = arith.subf %89, %88 : vector<1x512xf32>
    %91 = arith.subf %78, %88 : vector<1x512xf32>
    %92 = vector.extract_strided_slice %90 {offsets = [0, 0], sizes = [1, 256], strides = [1, 1]} : vector<1x512xf32> to vector<1x256xf32>
    %c0_47 = arith.constant 0 : index
    %c0_48 = arith.constant 0 : index
    %c0_49 = arith.constant 0 : index
    %93 = vector.load %arg12[%c0_47, %c0_48, %c0_49] : memref<2x2x256xf32, #tpu.memory_space<vmem>>, vector<1x1x256xf32>
    %94 = vector.shape_cast %93 : vector<1x1x256xf32> to vector<1x256xf32>
    %95 = vector.shape_cast %92 : vector<1x256xf32> to vector<1x1x256xf32>
    tpu.vector_store %arg12[%c0_47, %c0_48, %c0_49], %95 {strides = array<i32>} : memref<2x2x256xf32, #tpu.memory_space<vmem>>, vector<1x1x256xf32>,
    %96 = vector.extract_strided_slice %91 {offsets = [0, 0], sizes = [1, 256], strides = [1, 1]} : vector<1x512xf32> to vector<1x256xf32>
    %c0_50 = arith.constant 0 : index
    %c1_51 = arith.constant 1 : index
    %c0_52 = arith.constant 0 : index
    %97 = vector.load %arg12[%c0_50, %c1_51, %c0_52] : memref<2x2x256xf32, #tpu.memory_space<vmem>>, vector<1x1x256xf32>
    %98 = vector.shape_cast %97 : vector<1x1x256xf32> to vector<1x256xf32>
    %99 = vector.shape_cast %96 : vector<1x256xf32> to vector<1x1x256xf32>
    tpu.vector_store %arg12[%c0_50, %c1_51, %c0_52], %99 {strides = array<i32>} : memref<2x2x256xf32, #tpu.memory_space<vmem>>, vector<1x1x256xf32>,
    %100 = vector.extract_strided_slice %90 {offsets = [0, 256], sizes = [1, 256], strides = [1, 1]} : vector<1x512xf32> to vector<1x256xf32>
    %c1_53 = arith.constant 1 : index
    %c0_54 = arith.constant 0 : index
    %c0_55 = arith.constant 0 : index
    %101 = vector.load %arg12[%c1_53, %c0_54, %c0_55] : memref<2x2x256xf32, #tpu.memory_space<vmem>>, vector<1x1x256xf32>
    %102 = vector.shape_cast %101 : vector<1x1x256xf32> to vector<1x256xf32>
    %103 = vector.shape_cast %100 : vector<1x256xf32> to vector<1x1x256xf32>
    tpu.vector_store %arg12[%c1_53, %c0_54, %c0_55], %103 {strides = array<i32>} : memref<2x2x256xf32, #tpu.memory_space<vmem>>, vector<1x1x256xf32>,
    %104 = vector.extract_strided_slice %91 {offsets = [0, 256], sizes = [1, 256], strides = [1, 1]} : vector<1x512xf32> to vector<1x256xf32>
    %c1_56 = arith.constant 1 : index
    %c1_57 = arith.constant 1 : index
    %c0_58 = arith.constant 0 : index
    %105 = vector.load %arg12[%c1_56, %c1_57, %c0_58] : memref<2x2x256xf32, #tpu.memory_space<vmem>>, vector<1x1x256xf32>
    %106 = vector.shape_cast %105 : vector<1x1x256xf32> to vector<1x256xf32>
    %107 = vector.shape_cast %104 : vector<1x256xf32> to vector<1x1x256xf32>
    tpu.vector_store %arg12[%c1_56, %c1_57, %c0_58], %107 {strides = array<i32>} : memref<2x2x256xf32, #tpu.memory_space<vmem>>, vector<1x1x256xf32>,
    return
  }
  func.func @transform_0(%arg0: i32) -> (i32, i32, i32) {
    %c0_i32 = arith.constant 0 : i32
    %c0_i32_0 = arith.constant 0 : i32
    %c0_i32_1 = arith.constant 0 : i32
    %c0_i32_2 = arith.constant 0 : i32
    return %c0_i32, %c0_i32_0, %c0_i32_1 : i32, i32, i32
  }
  func.func @transform_1(%arg0: i32) -> (i32, i32) {
    %c0_i32 = arith.constant 0 : i32
    %c0_i32_0 = arith.constant 0 : i32
    %c0_i32_1 = arith.constant 0 : i32
    return %c0_i32, %c0_i32_0 : i32, i32
  }
  func.func @transform_2(%arg0: i32) -> (i32, i32) {
    %c0_i32 = arith.constant 0 : i32
    %c0_i32_0 = arith.constant 0 : i32
    %c0_i32_1 = arith.constant 0 : i32
    return %c0_i32, %c0_i32_0 : i32, i32
  }
  func.func @transform_3(%arg0: i32) -> (i32, i32) {
    %c0_i32 = arith.constant 0 : i32
    %c0_i32_0 = arith.constant 0 : i32
    %c0_i32_1 = arith.constant 0 : i32
    return %c0_i32, %c0_i32_0 : i32, i32
  }
  func.func @transform_4(%arg0: i32) -> (i32, i32) {
    %c0_i32 = arith.constant 0 : i32
    %c0_i32_0 = arith.constant 0 : i32
    %c0_i32_1 = arith.constant 0 : i32
    return %c0_i32, %c0_i32_0 : i32, i32
  }
  func.func @transform_5(%arg0: i32) -> (i32, i32) {
    %c0_i32 = arith.constant 0 : i32
    %c0_i32_0 = arith.constant 0 : i32
    %c0_i32_1 = arith.constant 0 : i32
    return %c0_i32, %c0_i32_0 : i32, i32
  }
  func.func @transform_6(%arg0: i32) -> (i32, i32) {
    %c0_i32 = arith.constant 0 : i32
    %c0_i32_0 = arith.constant 0 : i32
    %c0_i32_1 = arith.constant 0 : i32
    return %c0_i32, %c0_i32_0 : i32, i32
  }
  func.func @transform_7(%arg0: i32) -> (i32, i32) {
    %c0_i32 = arith.constant 0 : i32
    %c0_i32_0 = arith.constant 0 : i32
    %c0_i32_1 = arith.constant 0 : i32
    return %c0_i32, %c0_i32_0 : i32, i32
  }
  func.func @transform_8(%arg0: i32) -> (i32, i32) {
    %c0_i32 = arith.constant 0 : i32
    %c0_i32_0 = arith.constant 0 : i32
    %c0_i32_1 = arith.constant 0 : i32
    return %c0_i32, %c0_i32_0 : i32, i32
  }
  func.func @transform_9(%arg0: i32) -> (i32, i32) {
    %c0_i32 = arith.constant 0 : i32
    %c0_i32_0 = arith.constant 0 : i32
    %c0_i32_1 = arith.constant 0 : i32
    return %c0_i32, %c0_i32_0 : i32, i32
  }
  func.func @transform_10(%arg0: i32) -> (i32, i32) {
    %c0_i32 = arith.constant 0 : i32
    %c0_i32_0 = arith.constant 0 : i32
    %c0_i32_1 = arith.constant 0 : i32
    return %c0_i32, %c0_i32_0 : i32, i32
  }
  func.func @transform_11(%arg0: i32) -> (i32, i32, i32) {
    %c0_i32 = arith.constant 0 : i32
    %c0_i32_0 = arith.constant 0 : i32
    %c0_i32_1 = arith.constant 0 : i32
    %c0_i32_2 = arith.constant 0 : i32
    return %c0_i32, %c0_i32_0, %c0_i32_1 : i32, i32, i32
  }
}

module attributes {stable_mosaic.version = 11 : i64} {
  func.func @predictor_kernel(%arg0: i32, %arg1: memref<2x32x256xf32, #tpu.memory_space<vmem>>, %arg2: memref<32x32xbf16, #tpu.memory_space<vmem>>, %arg3: memref<32x1xf32, #tpu.memory_space<vmem>>, %arg4: memref<512x8xbf16, #tpu.memory_space<vmem>>, %arg5: memref<8x512xf32, #tpu.memory_space<vmem>>, %arg6: memref<16x32xbf16, #tpu.memory_space<vmem>>, %arg7: memref<16x1xf32, #tpu.memory_space<vmem>>, %arg8: memref<8x16xbf16, #tpu.memory_space<vmem>>, %arg9: memref<8x1xf32, #tpu.memory_space<vmem>>, %arg10: memref<8x1xf32, #tpu.memory_space<vmem>>, %arg11: memref<1x1xf32, #tpu.memory_space<vmem>>, %arg12: memref<2x2x256xf32, #tpu.memory_space<vmem>>) attributes {dimension_semantics = [#tpu.dimension_semantics<arbitrary>], iteration_bounds = array<i64: 1>, scalar_prefetch = 0 : i64, scratch_operands = 0 : i64, tpu.core_type = #tpu.core_type<tc>, window_params = [{pipeline_mode = #tpu.pipeline_mode<synchronous>, transform_indices = @transform_0, window_bounds = array<i64: 2, 32, 256>}, {pipeline_mode = #tpu.pipeline_mode<synchronous>, transform_indices = @transform_1, window_bounds = array<i64: 32, 32>}, {pipeline_mode = #tpu.pipeline_mode<synchronous>, transform_indices = @transform_2, window_bounds = array<i64: 32, 1>}, {pipeline_mode = #tpu.pipeline_mode<synchronous>, transform_indices = @transform_3, window_bounds = array<i64: 512, 8>}, {pipeline_mode = #tpu.pipeline_mode<synchronous>, transform_indices = @transform_4, window_bounds = array<i64: 8, 512>}, {pipeline_mode = #tpu.pipeline_mode<synchronous>, transform_indices = @transform_5, window_bounds = array<i64: 16, 32>}, {pipeline_mode = #tpu.pipeline_mode<synchronous>, transform_indices = @transform_6, window_bounds = array<i64: 16, 1>}, {pipeline_mode = #tpu.pipeline_mode<synchronous>, transform_indices = @transform_7, window_bounds = array<i64: 8, 16>}, {pipeline_mode = #tpu.pipeline_mode<synchronous>, transform_indices = @transform_8, window_bounds = array<i64: 8, 1>}, {pipeline_mode = #tpu.pipeline_mode<synchronous>, transform_indices = @transform_9, window_bounds = array<i64: 8, 1>}, {pipeline_mode = #tpu.pipeline_mode<synchronous>, transform_indices = @transform_10, window_bounds = array<i64: 1, 1>}, {pipeline_mode = #tpu.pipeline_mode<synchronous>, transform_indices = @transform_11, window_bounds = array<i64: 2, 2, 256>}]} {
    %c0 = arith.constant 0 : index
    %c0_0 = arith.constant 0 : index
    %c0_1 = arith.constant 0 : index
    %0 = vector.load %arg1[%c0, %c0_0, %c0_1] : memref<2x32x256xf32, #tpu.memory_space<vmem>>, vector<1x32x256xf32>
    %1 = vector.shape_cast %0 : vector<1x32x256xf32> to vector<32x256xf32>
    %c1 = arith.constant 1 : index
    %c0_2 = arith.constant 0 : index
    %c0_3 = arith.constant 0 : index
    %2 = vector.load %arg1[%c1, %c0_2, %c0_3] : memref<2x32x256xf32, #tpu.memory_space<vmem>>, vector<1x32x256xf32>
    %3 = vector.shape_cast %2 : vector<1x32x256xf32> to vector<32x256xf32>
    %4 = tpu.concatenate %1, %3 in 1 : vector<32x256xf32>, vector<32x256xf32> -> vector<32x512xf32>
    %cst = arith.constant dense<0.000000e+00> : vector<512xf32>
    %5 = vector.multi_reduction <add>, %4, %cst [0] : vector<32x512xf32> to vector<512xf32>
    %6 = vector.shape_cast %5 : vector<512xf32> to vector<1x512xf32>
    %cst_4 = arith.constant 3.200000e+01 : f32
    %7 = vector.broadcast %cst_4 : f32 to vector<1x512xf32>
    %8 = arith.divf %6, %7 : vector<1x512xf32>
    %9 = vector.broadcast %8 : vector<1x512xf32> to vector<32x512xf32>
    %10 = arith.subf %4, %9 : vector<32x512xf32>
    %11 = arith.mulf %10, %10 : vector<32x512xf32>
    %cst_5 = arith.constant dense<0.000000e+00> : vector<512xf32>
    %12 = vector.multi_reduction <add>, %11, %cst_5 [0] : vector<32x512xf32> to vector<512xf32>
    %13 = vector.shape_cast %12 : vector<512xf32> to vector<1x512xf32>
    %cst_6 = arith.constant 3.200000e+01 : f32
    %14 = vector.broadcast %cst_6 : f32 to vector<1x512xf32>
    %15 = arith.divf %13, %14 : vector<1x512xf32>
    %cst_7 = arith.constant 9.99999974E-6 : f32
    %16 = vector.broadcast %cst_7 : f32 to vector<1x512xf32>
    %17 = arith.addf %15, %16 : vector<1x512xf32>
    %18 = math.rsqrt %17 : vector<1x512xf32>
    %19 = vector.broadcast %18 : vector<1x512xf32> to vector<32x512xf32>
    %20 = arith.mulf %10, %19 : vector<32x512xf32>
    %c0_8 = arith.constant 0 : index
    %c0_9 = arith.constant 0 : index
    %21 = vector.load %arg2[%c0_8, %c0_9] : memref<32x32xbf16, #tpu.memory_space<vmem>>, vector<32x32xbf16>
    %22 = arith.truncf %20 : vector<32x512xf32> to vector<32x512xbf16>
    %cst_10 = arith.constant dense<0.000000e+00> : vector<32x512xf32>
    %23 = tpu.matmul %21, %22, %cst_10 {dimension_numbers = #tpu.dot_dimension_numbers<[1], [0], [0], [1], [0, 0, 1, 1], [], []>} : vector<32x32xbf16>, vector<32x512xbf16>, vector<32x512xf32> -> vector<32x512xf32>
    %c0_11 = arith.constant 0 : index
    %c0_12 = arith.constant 0 : index
    %24 = vector.load %arg3[%c0_11, %c0_12] : memref<32x1xf32, #tpu.memory_space<vmem>>, vector<32x1xf32>
    %25 = vector.broadcast %24 : vector<32x1xf32> to vector<32x512xf32>
    %26 = arith.addf %23, %25 : vector<32x512xf32>
    %cst_13 = arith.constant 5.000000e-01 : f32
    %27 = vector.broadcast %cst_13 : f32 to vector<32x512xf32>
    %28 = arith.mulf %27, %26 : vector<32x512xf32>
    %cst_14 = arith.constant 0.707106769 : f32
    %29 = vector.broadcast %cst_14 : f32 to vector<32x512xf32>
    %30 = arith.mulf %26, %29 : vector<32x512xf32>
    %31 = math.erf %30 : vector<32x512xf32>
    %cst_15 = arith.constant 1.000000e+00 : f32
    %32 = vector.broadcast %cst_15 : f32 to vector<32x512xf32>
    %33 = arith.addf %32, %31 : vector<32x512xf32>
    %34 = arith.mulf %28, %33 : vector<32x512xf32>
    %35 = arith.truncf %34 : vector<32x512xf32> to vector<32x512xbf16>
    %36 = vector.extract_strided_slice %35 {offsets = [0, 0], sizes = [16, 512], strides = [1, 1]} : vector<32x512xbf16> to vector<16x512xbf16>
    %37 = vector.extract_strided_slice %35 {offsets = [16, 0], sizes = [16, 512], strides = [1, 1]} : vector<32x512xbf16> to vector<16x512xbf16>
    %c0_16 = arith.constant 0 : index
    %c0_17 = arith.constant 0 : index
    %38 = vector.load %arg4[%c0_16, %c0_17] : memref<512x8xbf16, #tpu.memory_space<vmem>>, vector<512x8xbf16>
    %cst_18 = arith.constant dense<0.000000e+00> : vector<16x8xf32>
    %39 = tpu.matmul %37, %38, %cst_18 {dimension_numbers = #tpu.dot_dimension_numbers<[1], [0], [0], [1], [0, 0, 1, 1], [], []>} : vector<16x512xbf16>, vector<512x8xbf16>, vector<16x8xf32> -> vector<16x8xf32>
    %c0_19 = arith.constant 0 : index
    %c0_20 = arith.constant 0 : index
    %40 = vector.load %arg5[%c0_19, %c0_20] : memref<8x512xf32, #tpu.memory_space<vmem>>, vector<8x512xf32>
    %cst_21 = arith.constant dense<0.000000e+00> : vector<16x512xf32>
    %41 = tpu.matmul %39, %40, %cst_21 {dimension_numbers = #tpu.dot_dimension_numbers<[1], [0], [0], [1], [0, 0, 1, 1], [], []>} : vector<16x8xf32>, vector<8x512xf32>, vector<16x512xf32> -> vector<16x512xf32>
    %42 = arith.truncf %41 : vector<16x512xf32> to vector<16x512xbf16>
    %43 = tpu.concatenate %36, %42 in 0 : vector<16x512xbf16>, vector<16x512xbf16> -> vector<32x512xbf16>
    %c0_22 = arith.constant 0 : index
    %c0_23 = arith.constant 0 : index
    %44 = vector.load %arg6[%c0_22, %c0_23] : memref<16x32xbf16, #tpu.memory_space<vmem>>, vector<16x32xbf16>
    %cst_24 = arith.constant dense<0.000000e+00> : vector<16x512xf32>
    %45 = tpu.matmul %44, %43, %cst_24 {dimension_numbers = #tpu.dot_dimension_numbers<[1], [0], [0], [1], [0, 0, 1, 1], [], []>} : vector<16x32xbf16>, vector<32x512xbf16>, vector<16x512xf32> -> vector<16x512xf32>
    %c0_25 = arith.constant 0 : index
    %c0_26 = arith.constant 0 : index
    %46 = vector.load %arg7[%c0_25, %c0_26] : memref<16x1xf32, #tpu.memory_space<vmem>>, vector<16x1xf32>
    %47 = vector.broadcast %46 : vector<16x1xf32> to vector<16x512xf32>
    %48 = arith.addf %45, %47 : vector<16x512xf32>
    %cst_27 = arith.constant 5.000000e-01 : f32
    %49 = vector.broadcast %cst_27 : f32 to vector<16x512xf32>
    %50 = arith.mulf %49, %48 : vector<16x512xf32>
    %cst_28 = arith.constant 0.707106769 : f32
    %51 = vector.broadcast %cst_28 : f32 to vector<16x512xf32>
    %52 = arith.mulf %48, %51 : vector<16x512xf32>
    %53 = math.erf %52 : vector<16x512xf32>
    %cst_29 = arith.constant 1.000000e+00 : f32
    %54 = vector.broadcast %cst_29 : f32 to vector<16x512xf32>
    %55 = arith.addf %54, %53 : vector<16x512xf32>
    %56 = arith.mulf %50, %55 : vector<16x512xf32>
    %c0_30 = arith.constant 0 : index
    %c0_31 = arith.constant 0 : index
    %57 = vector.load %arg8[%c0_30, %c0_31] : memref<8x16xbf16, #tpu.memory_space<vmem>>, vector<8x16xbf16>
    %58 = arith.truncf %56 : vector<16x512xf32> to vector<16x512xbf16>
    %cst_32 = arith.constant dense<0.000000e+00> : vector<8x512xf32>
    %59 = tpu.matmul %57, %58, %cst_32 {dimension_numbers = #tpu.dot_dimension_numbers<[1], [0], [0], [1], [0, 0, 1, 1], [], []>} : vector<8x16xbf16>, vector<16x512xbf16>, vector<8x512xf32> -> vector<8x512xf32>
    %c0_33 = arith.constant 0 : index
    %c0_34 = arith.constant 0 : index
    %60 = vector.load %arg9[%c0_33, %c0_34] : memref<8x1xf32, #tpu.memory_space<vmem>>, vector<8x1xf32>
    %61 = vector.broadcast %60 : vector<8x1xf32> to vector<8x512xf32>
    %62 = arith.addf %59, %61 : vector<8x512xf32>
    %cst_35 = arith.constant 5.000000e-01 : f32
    %63 = vector.broadcast %cst_35 : f32 to vector<8x512xf32>
    %64 = arith.mulf %63, %62 : vector<8x512xf32>
    %cst_36 = arith.constant 0.707106769 : f32
    %65 = vector.broadcast %cst_36 : f32 to vector<8x512xf32>
    %66 = arith.mulf %62, %65 : vector<8x512xf32>
    %67 = math.erf %66 : vector<8x512xf32>
    %cst_37 = arith.constant 1.000000e+00 : f32
    %68 = vector.broadcast %cst_37 : f32 to vector<8x512xf32>
    %69 = arith.addf %68, %67 : vector<8x512xf32>
    %70 = arith.mulf %64, %69 : vector<8x512xf32>
    %c0_38 = arith.constant 0 : index
    %c0_39 = arith.constant 0 : index
    %71 = vector.load %arg10[%c0_38, %c0_39] : memref<8x1xf32, #tpu.memory_space<vmem>>, vector<8x1xf32>
    %72 = vector.broadcast %71 : vector<8x1xf32> to vector<8x512xf32>
    %73 = arith.mulf %70, %72 : vector<8x512xf32>
    %cst_40 = arith.constant dense<0.000000e+00> : vector<512xf32>
    %74 = vector.multi_reduction <add>, %73, %cst_40 [0] : vector<8x512xf32> to vector<512xf32>
    %75 = vector.shape_cast %74 : vector<512xf32> to vector<1x512xf32>
    %c0_41 = arith.constant 0 : index
    %c0_42 = arith.constant 0 : index
    %76 = vector.load %arg11[%c0_41, %c0_42] : memref<1x1xf32, #tpu.memory_space<vmem>>, vector<1x1xf32>
    %77 = vector.broadcast %76 : vector<1x1xf32> to vector<1x512xf32>
    %78 = arith.addf %75, %77 : vector<1x512xf32>
    %cst_43 = arith.constant 0.000000e+00 : f32
    %79 = vector.broadcast %cst_43 : f32 to vector<1x512xf32>
    %80 = arith.maximumf %78, %79 : vector<1x512xf32>
    %81 = math.absf %78 : vector<1x512xf32>
    %cst_44 = arith.constant 0.000000e+00 : f32
    %82 = vector.broadcast %cst_44 : f32 to vector<1x512xf32>
    %83 = arith.subf %82, %81 : vector<1x512xf32>
    %84 = math.exp %83 : vector<1x512xf32>
    %cst_45 = arith.constant 1.000000e+00 : f32
    %85 = vector.broadcast %cst_45 : f32 to vector<1x512xf32>
    %86 = arith.addf %85, %84 : vector<1x512xf32>
    %87 = math.log %86 : vector<1x512xf32>
    %88 = arith.addf %80, %87 : vector<1x512xf32>
    %cst_46 = arith.constant 0.000000e+00 : f32
    %89 = vector.broadcast %cst_46 : f32 to vector<1x512xf32>
    %90 = arith.subf %89, %88 : vector<1x512xf32>
    %91 = arith.subf %78, %88 : vector<1x512xf32>
    %92 = vector.extract_strided_slice %90 {offsets = [0, 0], sizes = [1, 256], strides = [1, 1]} : vector<1x512xf32> to vector<1x256xf32>
    %c0_47 = arith.constant 0 : index
    %c0_48 = arith.constant 0 : index
    %c0_49 = arith.constant 0 : index
    %93 = vector.load %arg12[%c0_47, %c0_48, %c0_49] : memref<2x2x256xf32, #tpu.memory_space<vmem>>, vector<1x1x256xf32>
    %94 = vector.shape_cast %93 : vector<1x1x256xf32> to vector<1x256xf32>
    %95 = vector.shape_cast %92 : vector<1x256xf32> to vector<1x1x256xf32>
    tpu.vector_store %arg12[%c0_47, %c0_48, %c0_49], %95 {strides = array<i32>} : memref<2x2x256xf32, #tpu.memory_space<vmem>>, vector<1x1x256xf32>,
    %96 = vector.extract_strided_slice %91 {offsets = [0, 0], sizes = [1, 256], strides = [1, 1]} : vector<1x512xf32> to vector<1x256xf32>
    %c0_50 = arith.constant 0 : index
    %c1_51 = arith.constant 1 : index
    %c0_52 = arith.constant 0 : index
    %97 = vector.load %arg12[%c0_50, %c1_51, %c0_52] : memref<2x2x256xf32, #tpu.memory_space<vmem>>, vector<1x1x256xf32>
    %98 = vector.shape_cast %97 : vector<1x1x256xf32> to vector<1x256xf32>
    %99 = vector.shape_cast %96 : vector<1x256xf32> to vector<1x1x256xf32>
    tpu.vector_store %arg12[%c0_50, %c1_51, %c0_52], %99 {strides = array<i32>} : memref<2x2x256xf32, #tpu.memory_space<vmem>>, vector<1x1x256xf32>,
    %100 = vector.extract_strided_slice %90 {offsets = [0, 256], sizes = [1, 256], strides = [1, 1]} : vector<1x512xf32> to vector<1x256xf32>
    %c1_53 = arith.constant 1 : index
    %c0_54 = arith.constant 0 : index
    %c0_55 = arith.constant 0 : index
    %101 = vector.load %arg12[%c1_53, %c0_54, %c0_55] : memref<2x2x256xf32, #tpu.memory_space<vmem>>, vector<1x1x256xf32>
    %102 = vector.shape_cast %101 : vector<1x1x256xf32> to vector<1x256xf32>
    %103 = vector.shape_cast %100 : vector<1x256xf32> to vector<1x1x256xf32>
    tpu.vector_store %arg12[%c1_53, %c0_54, %c0_55], %103 {strides = array<i32>} : memref<2x2x256xf32, #tpu.memory_space<vmem>>, vector<1x1x256xf32>,
    %104 = vector.extract_strided_slice %91 {offsets = [0, 256], sizes = [1, 256], strides = [1, 1]} : vector<1x512xf32> to vector<1x256xf32>
    %c1_56 = arith.constant 1 : index
    %c1_57 = arith.constant 1 : index
    %c0_58 = arith.constant 0 : index
    %105 = vector.load %arg12[%c1_56, %c1_57, %c0_58] : memref<2x2x256xf32, #tpu.memory_space<vmem>>, vector<1x1x256xf32>
    %106 = vector.shape_cast %105 : vector<1x1x256xf32> to vector<1x256xf32>
    %107 = vector.shape_cast %104 : vector<1x256xf32> to vector<1x1x256xf32>
    tpu.vector_store %arg12[%c1_56, %c1_57, %c0_58], %107 {strides = array<i32>} : memref<2x2x256xf32, #tpu.memory_space<vmem>>, vector<1x1x256xf32>,
    return
  }
  func.func @transform_0(%arg0: i32) -> (i32, i32, i32) {
    %c0_i32 = arith.constant 0 : i32
    %c0_i32_0 = arith.constant 0 : i32
    %c0_i32_1 = arith.constant 0 : i32
    %c0_i32_2 = arith.constant 0 : i32
    return %c0_i32, %c0_i32_0, %c0_i32_1 : i32, i32, i32
  }
  func.func @transform_1(%arg0: i32) -> (i32, i32) {
    %c0_i32 = arith.constant 0 : i32
    %c0_i32_0 = arith.constant 0 : i32
    %c0_i32_1 = arith.constant 0 : i32
    return %c0_i32, %c0_i32_0 : i32, i32
  }
  func.func @transform_2(%arg0: i32) -> (i32, i32) {
    %c0_i32 = arith.constant 0 : i32
    %c0_i32_0 = arith.constant 0 : i32
    %c0_i32_1 = arith.constant 0 : i32
    return %c0_i32, %c0_i32_0 : i32, i32
  }
  func.func @transform_3(%arg0: i32) -> (i32, i32) {
    %c0_i32 = arith.constant 0 : i32
    %c0_i32_0 = arith.constant 0 : i32
    %c0_i32_1 = arith.constant 0 : i32
    return %c0_i32, %c0_i32_0 : i32, i32
  }
  func.func @transform_4(%arg0: i32) -> (i32, i32) {
    %c0_i32 = arith.constant 0 : i32
    %c0_i32_0 = arith.constant 0 : i32
    %c0_i32_1 = arith.constant 0 : i32
    return %c0_i32, %c0_i32_0 : i32, i32
  }
  func.func @transform_5(%arg0: i32) -> (i32, i32) {
    %c0_i32 = arith.constant 0 : i32
    %c0_i32_0 = arith.constant 0 : i32
    %c0_i32_1 = arith.constant 0 : i32
    return %c0_i32, %c0_i32_0 : i32, i32
  }
  func.func @transform_6(%arg0: i32) -> (i32, i32) {
    %c0_i32 = arith.constant 0 : i32
    %c0_i32_0 = arith.constant 0 : i32
    %c0_i32_1 = arith.constant 0 : i32
    return %c0_i32, %c0_i32_0 : i32, i32
  }
  func.func @transform_7(%arg0: i32) -> (i32, i32) {
    %c0_i32 = arith.constant 0 : i32
    %c0_i32_0 = arith.constant 0 : i32
    %c0_i32_1 = arith.constant 0 : i32
    return %c0_i32, %c0_i32_0 : i32, i32
  }
  func.func @transform_8(%arg0: i32) -> (i32, i32) {
    %c0_i32 = arith.constant 0 : i32
    %c0_i32_0 = arith.constant 0 : i32
    %c0_i32_1 = arith.constant 0 : i32
    return %c0_i32, %c0_i32_0 : i32, i32
  }
  func.func @transform_9(%arg0: i32) -> (i32, i32) {
    %c0_i32 = arith.constant 0 : i32
    %c0_i32_0 = arith.constant 0 : i32
    %c0_i32_1 = arith.constant 0 : i32
    return %c0_i32, %c0_i32_0 : i32, i32
  }
  func.func @transform_10(%arg0: i32) -> (i32, i32) {
    %c0_i32 = arith.constant 0 : i32
    %c0_i32_0 = arith.constant 0 : i32
    %c0_i32_1 = arith.constant 0 : i32
    return %c0_i32, %c0_i32_0 : i32, i32
  }
  func.func @transform_11(%arg0: i32) -> (i32, i32, i32) {
    %c0_i32 = arith.constant 0 : i32
    %c0_i32_0 = arith.constant 0 : i32
    %c0_i32_1 = arith.constant 0 : i32
    %c0_i32_2 = arith.constant 0 : i32
    return %c0_i32, %c0_i32_0, %c0_i32_1 : i32, i32, i32
  }
}

</mosaic_0001>

<bundles_post_ra>
// kernel: tpu_custom_call.1
= control target key start
LH: loop header
LB: loop body
LE: loop exit
PB: predicated region body
PF: predicated region fallthrough
CT: control target
= control target key end

     0   :  { %s2179_s0 = inlined_call_operand.vmem [shape: f32[2,32,256], index: 0, kind: input, shape index: {}]   ;;  %s2180_s1 = inlined_call_operand.vmem [shape: bf16[32,32], index: 1, kind: input, shape index: {}]   ;;  %s2181_s2 = inlined_call_operand.vmem [shape: f32[32,1], index: 2, kind: input, shape index: {}]   ;;  %s2182_s3 = inlined_call_operand.vmem [shape: bf16[512,8], index: 3, kind: input, shape index: {}]   ;;  %s2183_s4 = inlined_call_operand.vmem [shape: f32[8,512], index: 4, kind: input, shape index: {}]   ;;  %s2184_s5 = inlined_call_operand.vmem [shape: bf16[16,32], index: 5, kind: input, shape index: {}]   ;;  %s2185_s6 = inlined_call_operand.vmem [shape: f32[16,1], index: 6, kind: input, shape index: {}]   ;;  %s2186_s7 = inlined_call_operand.vmem [shape: bf16[8,16], index: 7, kind: input, shape index: {}]   ;;  %s2187_s8 = inlined_call_operand.vmem [shape: f32[8,1], index: 8, kind: input, shape index: {}]   ;;  %s2188_s9 = inlined_call_operand.vmem [shape: f32[8,1], index: 9, kind: input, shape index: {}]   ;;  %s2189_s10 = inlined_call_operand.<no memory space> [shape: f32[1,1], index: 10, kind: input, shape index: {}]   ;;  %s2190_s11 = inlined_call_operand.hbm [shape: f32[2,2,256], index: 11, kind: output, shape index: {}]  }
   0x1   :  { %v16_v0 = vstv %s2189_s10 }
   0x2   :  { %17 = vst [vmem:[#allocation2] sm:$0x1] %v16_v0 }
   0x3   :  { %v1723_v1 = vld [vmem:[%s2179_s0 + $0x8] sm:$0xff]  ;;  %v1728_v2 = vld [vmem:[%s2179_s0 + $0x18] sm:$0xff]  ;;  %v1651_v7 = vmov 0   ;;  %v1764_v11 = vld [vmem:[%s2179_s0] sm:$0xff] }
   0x4   :  { %v1733_v3 = vld [vmem:[%s2179_s0 + $0x28] sm:$0xff]  ;;  %v68_v4 = vadd.f32 %v1728_v2, %v1723_v1  ;;  %v1745_v6 = vld [vmem:[%s2179_s0 + $0x58] sm:$0xff]  ;;  %281 = vmatprep.mubr.bf16.mxu0 %v1651_v7  ;;  %334 = vmatprep.mubr.bf16.mxu1 %v1651_v7  ;;  %v1775_v14 = vld [vmem:[%s2179_s0 + $0x10] sm:$0xff] }
   0x5   :  { %v1740_v5 = vld [vmem:[%s2179_s0 + $0x48] sm:$0xff]  ;;  %v1752_v8 = vld [vmem:[%s2179_s0 + $0x38] sm:$0xff]  ;;  %1512 = vset.pattern.permute.xlu0 %v1651_v7  ;;  %1513 = vset.pattern.permute.xlu1 %v1651_v7  ;;  %v1780_v15 = vld [vmem:[%s2179_s0 + $0x20] sm:$0xff]  ;;  %v59_v17 = vadd.f32 %v1775_v14, %v1764_v11 }
   0x6   :  { %v1757_v9 = vld [vmem:[%s2179_s0 + $0x68] sm:$0xff]  ;;  %v86_v10 = vadd.f32 %v1745_v6, %v1740_v5  ;;  %v69_v12 = vadd.f32 %v68_v4, %v1733_v3  ;;  %v1414_v13 = vld [vmem:[%s2179_s0 + $0x78] sm:$0xff]  ;;  %v1788_v18 = vld [vmem:[%s2179_s0 + $0x40] sm:$0xff] }
   0x7   :  { %v1793_v19 = vld [vmem:[%s2179_s0 + $0x50] sm:$0xff]  ;;  %v1798_v20 = vld [vmem:[%s2179_s0 + $0x60] sm:$0xff]  ;;  %v60_v25 = vadd.f32 %v59_v17, %v1780_v15  ;;  %v211_v35 = vld [vmem:[%s2181_s2 + $0x18] sm:$0xff] }
   0x8   :  { %v87_v16 = vadd.f32 %v1757_v9, %v86_v10  ;;  %v70_v21 = vadd.f32 %v69_v12, %v1752_v8  ;;  %v1804_v22 = vld [vmem:[%s2179_s0 + $0x30] sm:$0xff]  ;;  %v77_v23 = vadd.f32 %v1793_v19, %v1788_v18  ;;  %v208_v32 = vld [vmem:[%s2181_s2] sm:$0xff]  ;;  %v209_v38 = vld [vmem:[%s2181_s2 + $0x8] sm:$0xff] }
   0x9   :  { %v1812_v26 = vld [vmem:[%s2179_s0 + $0x70] sm:$0xff]  ;;  %v61_v31 = vadd.f32 %v60_v25, %v1804_v22  ;;  %214 = vperm.xlu1 %1513, %v208_v32   ;;  %v952_v43 = vld [vmem:[%s2185_s6] sm:$0xff] }
   0xa   :  { %v88_v24 = vadd.f32 %v1414_v13, %v87_v16  ;;  %v71_v27 = vrot.slane %v70_v21, 4  ;;  %v78_v28 = vadd.f32 %v1798_v20, %v77_v23  ;;  %v210_v29 = vld [vmem:[%s2181_s2 + $0x10] sm:$0xff]  ;;  %v1103_v52 = vld [vmem:[%s2187_s8] sm:$0xff] }
   0xb   :  { %224 = vperm.xlu0 %1512, %v210_v29   ;;  %v62_v37 = vrot.slane %v61_v31, 4  ;;  %v1249_v58 = vld [vmem:[#allocation2] sm:$0x1] }
   0xc   :  { %v89_v30 = vrot.slane %v88_v24, 4  ;;  %v72_v33 = vadd.f32 %v71_v27, %v70_v21  ;;  %v79_v34 = vadd.f32 %v1812_v26, %v78_v28 }
   0xd   :  { %v63_v42 = vadd.f32 %v62_v37, %v61_v31  ;;  %219 = vperm.xlu1 %1513, %v209_v38  }
   0xe   :  { %v90_v36 = vadd.f32 %v89_v30, %v88_v24  ;;  %v73_v39 = vrot.slane %v72_v33, 2  ;;  %v80_v40 = vrot.slane %v79_v34, 4 }
   0xf   :  { %229 = vperm.xlu0 %1512, %v211_v35   ;;  %v64_v47 = vrot.slane %v63_v42, 2 }
  0x10   :  { %v91_v41 = vrot.slane %v90_v36, 2  ;;  %v74_v44 = vadd.f32 %v73_v39, %v72_v33  ;;  %v81_v45 = vadd.f32 %v80_v40, %v79_v34 }
  0x11   :  { %v65_v51 = vadd.f32 %v64_v47, %v63_v42 }
  0x12   :  { %v92_v46 = vadd.f32 %v91_v41, %v90_v36  ;;  %v75_v48 = vrot.slane %v74_v44, 1  ;;  %v82_v49 = vrot.slane %v81_v45, 2 }
  0x13   :  { %956 = vperm.xlu0 %1512, %v952_v43   ;;  %v66_v56 = vrot.slane %v65_v51, 1 }
  0x14   :  { %v93_v50 = vrot.slane %v92_v46, 1  ;;  %v76_v53 = vadd.f32 %v75_v48, %v74_v44  ;;  %v83_v54 = vadd.f32 %v82_v49, %v81_v45 }
  0x15   :  { %v67_v60 = vadd.f32 %v66_v56, %v65_v51 }
  0x16   :  { %v94_v55 = vadd.f32 %v93_v50, %v92_v46  ;;  %v97_v57 = vmul.f32 0.03125, %v76_v53  ;;  %v84_v61 = vrot.slane %v83_v54, 1 }
  0x17   :  { %1106 = vperm.xlu0 %1512, %v1103_v52   ;;  %v96_v21 = vmul.f32 0.03125, %v67_v60 }
  0x18   :  { %v99_v59 = vmul.f32 0.03125, %v94_v55  ;;  %v1836_v62 = vsub.f32 %v1723_v1, %v97_v57  ;;  %v1839_v63 = vsub.f32 %v1728_v2, %v97_v57  ;;  %v1842_v0 = vsub.f32 %v1733_v3, %v97_v57 }
  0x19   :  { %v1845_v4 = vsub.f32 %v1752_v8, %v97_v57  ;;  %v85_v23 = vadd.f32 %v84_v61, %v83_v54  ;;  %v1875_v28 = vsub.f32 %v1764_v11, %v96_v21  ;;  %v1878_v29 = vsub.f32 %v1775_v14, %v96_v21 }
  0x1a   :  { %v1848_v10 = vsub.f32 %v1740_v5, %v99_v59  ;;  %v1851_v12 = vsub.f32 %v1745_v6, %v99_v59  ;;  %v1854_v16 = vsub.f32 %v1757_v9, %v99_v59  ;;  %v1856_v1 = vsub.f32 %v1414_v13, %v99_v59 }
  0x1b   :  { %v117_v2 = vmul.f32 %v1836_v62, %v1836_v62  ;;  %v121_v3 = vmul.f32 %v1839_v63, %v1839_v63  ;;  %v125_v8 = vmul.f32 %v1842_v0, %v1842_v0  ;;  %1252 = vperm.xlu0 %1512, %v1249_v58   ;;  %v129_v13 = vmul.f32 %v1845_v4, %v1845_v4 }
  0x1c   :  { %v119_v5 = vmul.f32 %v1848_v10, %v1848_v10  ;;  %v123_v6 = vmul.f32 %v1851_v12, %v1851_v12  ;;  %v127_v9 = vmul.f32 %v1854_v16, %v1854_v16  ;;  %v131_v24 = vmul.f32 %v1856_v1, %v1856_v1 }
  0x1d   :  { %v141_v17 = vadd.f32 %v121_v3, %v117_v2  ;;  %v1881_v30 = vsub.f32 %v1780_v15, %v96_v21  ;;  %v1884_v32 = vsub.f32 %v1804_v22, %v96_v21  ;;  %v98_v33 = vmul.f32 0.03125, %v85_v23 }
  0x1e   :  { %v159_v25 = vadd.f32 %v123_v6, %v119_v5  ;;  %v116_v35 = vmul.f32 %v1875_v28, %v1875_v28  ;;  %v120_v36 = vmul.f32 %v1878_v29, %v1878_v29 }
  0x1f   :  { %v142_v27 = vadd.f32 %v141_v17, %v125_v8  ;;  %v124_v11 = vmul.f32 %v1881_v30, %v1881_v30  ;;  %v128_v15 = vmul.f32 %v1884_v32, %v1884_v32  ;;  %v1895_v37 = vsub.f32 %v1788_v18, %v98_v33 }
  0x20   :  { %v160_v31 = vadd.f32 %v159_v25, %v127_v9  ;;  %v1898_v22 = vsub.f32 %v1793_v19, %v98_v33  ;;  %v132_v39 = vadd.f32 %v120_v36, %v116_v35  ;;  %v1901_v40 = vsub.f32 %v1798_v20, %v98_v33 }
  0x21   :  { %v143_v34 = vadd.f32 %v142_v27, %v129_v13  ;;  %v1904_v41 = vsub.f32 %v1812_v26, %v98_v33  ;;  %v118_v43 = vmul.f32 %v1895_v37, %v1895_v37 }
  0x22   :  { %v161_v14 = vadd.f32 %v160_v31, %v131_v24  ;;  %v122_v44 = vmul.f32 %v1898_v22, %v1898_v22  ;;  %v133_v45 = vadd.f32 %v132_v39, %v124_v11  ;;  %v126_v19 = vmul.f32 %v1901_v40, %v1901_v40 }
  0x23   :  { %v144_v38 = vrot.slane %v143_v34, 4  ;;  %v130_v20 = vmul.f32 %v1904_v41, %v1904_v41 }
  0x24   :  { %v162_v42 = vrot.slane %v161_v14, 4  ;;  %v150_v47 = vadd.f32 %v122_v44, %v118_v43  ;;  %v134_v26 = vadd.f32 %v133_v45, %v128_v15 }
  0x25   :  { %v145_v18 = vadd.f32 %v144_v38, %v143_v34 }
  0x26   :  { %v163_v46 = vadd.f32 %v162_v42, %v161_v14  ;;  %v151_v50 = vadd.f32 %v150_v47, %v126_v19 }
  0x27   :  { %v146_v48 = vrot.slane %v145_v18, 2 }
  0x28   :  { %v164_v49 = vrot.slane %v163_v46, 2 }
  0x29   :  { %18 = vsyncpa [#allocation4], 0  ;;  %v147_v51 = vadd.f32 %v146_v48, %v145_v18  ;;  %v135_v52 = vrot.slane %v134_v26, 4  ;;  %v152_v54 = vadd.f32 %v151_v50, %v130_v20  ;;  %vm242_vm0 = vcmask 261120   ;;  %v1521_v50 = vld [vmem:[%s2182_s3 + $0xf0] sm:$0xff]  }
  0x2a   :  { %v165_v53 = vadd.f32 %v164_v49, %v163_v46  ;;  %v1520_v49 = vld [vmem:[%s2182_s3 + $0x70] sm:$0xff]   ;;  %vm785_vm1 = vcmask 64512   ;;  %vm1109_vm2 = vcmask 130048  }
  0x2b   :  { %v148_v55 = vrot.slane %v147_v51, 1  ;;  %v136_v56 = vadd.f32 %v135_v52, %v134_v26  ;;  %v153_v58 = vrot.slane %v152_v54, 4  ;;  %v1523_v52 = vld [vmem:[%s2182_s3 + $0xb0] sm:$0xff]  }
  0x2c   :  { %v166_v57 = vrot.slane %v165_v53, 1 }
  0x2d   :  { %v149_v59 = vadd.f32 %v148_v55, %v147_v51  ;;  %v137_v60 = vrot.slane %v136_v56, 2  ;;  %v154_v2 = vadd.f32 %v153_v58, %v152_v54  ;;  %v1522_v51 = vld [vmem:[%s2182_s3 + $0x30] sm:$0xff]   ;;  %v1525_v54 = vld [vmem:[%s2182_s3 + $0xe8] sm:$0xff]   ;;  %v1529_v58 = vld [vmem:[%s2182_s3 + $0xe0] sm:$0xff]  }
  0x2e   :  { %v167_v61 = vadd.f32 %v166_v57, %v165_v53  ;;  %v1524_v53 = vld [vmem:[%s2182_s3 + $0x68] sm:$0xff]   ;;  %v1528_v57 = vld [vmem:[%s2182_s3 + $0x60] sm:$0xff]  }
  0x2f   :  { %v169_v3 = vmul.f32 0.03125, %v149_v59  ;;  %v138_v8 = vadd.f32 %v137_v60, %v136_v56  ;;  %v155_v6 = vrot.slane %v154_v2, 2  ;;  %v1526_v55 = vld [vmem:[%s2182_s3 + $0x28] sm:$0xff]   ;;  %v1530_v59 = vld [vmem:[%s2182_s3 + $0x20] sm:$0xff]  }
  0x30   :  { %v171_v5 = vmul.f32 0.03125, %v167_v61  ;;  %v1527_v56 = vld [vmem:[%s2182_s3 + $0xa8] sm:$0xff]   ;;  %v1531_v60 = vld [vmem:[%s2182_s3 + $0xa0] sm:$0xff]   ;;  %v1532_v61 = vld [vmem:[%s2182_s3 + $0x58] sm:$0xff]  }
  0x31   :  { %v173_v9 = vadd.f32 1e-05, %v169_v3  ;;  %v139_v13 = vrot.slane %v138_v8, 1  ;;  %v156_v21 = vadd.f32 %v155_v6, %v154_v2  ;;  %v1533_v2 = vld [vmem:[%s2182_s3 + $0xd8] sm:$0xff]   ;;  %v1537_v6 = vld [vmem:[%s2182_s3 + $0xd0] sm:$0xff]  }
  0x32   :  { %v175_v17 = vadd.f32 1e-05, %v171_v5  ;;  %v1534_v3 = vld [vmem:[%s2182_s3 + $0x18] sm:$0xff]   ;;  %v1536_v5 = vld [vmem:[%s2182_s3 + $0x50] sm:$0xff]  }
  0x33   :  { %1549 = vrsqrt.f32 %v173_v9  ;;  %v140_v23 = vadd.f32 %v139_v13, %v138_v8  ;;  %v157_v24 = vrot.slane %v156_v21, 1  ;;  %v1535_v8 = vld [vmem:[%s2182_s3 + $0x98] sm:$0xff]   ;;  %v1538_v9 = vld [vmem:[%s2182_s3 + $0x10] sm:$0xff]  }
  0x34   :  { %1551 = vrsqrt.f32 %v175_v17  ;;  %v1539_v13 = vld [vmem:[%s2182_s3 + $0x90] sm:$0xff]   ;;  %v1540_v17 = vld [vmem:[%s2182_s3 + $0x48] sm:$0xff]  }
  0x35   :  { %v168_v25 = vmul.f32 0.03125, %v140_v23  ;;  %v158_v27 = vadd.f32 %v157_v24, %v156_v21  ;;  %v1541_v21 = vld [vmem:[%s2182_s3 + $0xc8] sm:$0xff]  }
  0x36   :  { %v1542_v23 = vld [vmem:[%s2182_s3 + $0x8] sm:$0xff]  }
  0x37   :  { %v172_v31 = vadd.f32 1e-05, %v168_v25  ;;  %v170_v33 = vmul.f32 0.03125, %v158_v27  ;;  %v1543_v24 = vld [vmem:[%s2182_s3 + $0x88] sm:$0xff]   ;;  %v1544_v25 = vld [vmem:[%s2182_s3 + $0x40] sm:$0xff]  }
  0x38   :  { %v1545_v27 = vld [vmem:[%s2182_s3 + $0xc0] sm:$0xff]  }
  0x39   :  { %1553 = vrsqrt.f32 %v172_v31  ;;  %v174_v34 = vadd.f32 1e-05, %v170_v33  ;;  %v1546_v31 = vld [vmem:[%s2182_s3] sm:$0xff]  }
  0x3a   :  { %v1547_v33 = vld [vmem:[%s2182_s3 + $0x80] sm:$0xff]  }
  0x3b   :  { %1555 = vrsqrt.f32 %v174_v34 }
  0x40   :  { %v1550_v35 = vpop.eup %1549 }
  0x41   :  { %v1552_v36 = vpop.eup %1551  ;;  %v189_v11 = vmul.f32 %v1550_v35, %v1842_v0  ;;  %v193_v14 = vmul.f32 %v1550_v35, %v1845_v4  ;;  %v181_v43 = vmul.f32 %v1550_v35, %v1836_v62  ;;  %v185_v44 = vmul.f32 %v1550_v35, %v1839_v63 }
  0x42   :  { %v191_v15 = vmul.f32 %v1552_v36, %v1854_v16  ;;  %v195_v38 = vmul.f32 %v1552_v36, %v1856_v1  ;;  %v183_v45 = vmul.f32 %v1552_v36, %v1848_v10  ;;  %v187_v19 = vmul.f32 %v1552_v36, %v1851_v12 }
  0x43   :  { %v205_v39 = vpack.c.bf16 %v193_v14, %v189_v11  ;;  %v201_v46 = vpack.c.bf16 %v185_v44, %v181_v43 }
  0x44   :  { %v207_v42 = vpack.c.bf16 %v195_v38, %v191_v15  ;;  %v203_v12 = vpack.c.bf16 %v187_v19, %v183_v45 }
  0x45   :  { %261 = vmatprep.subr.bf16.mxu0 %v205_v39 }
  0x46   :  { %v1554_v18 = vpop.eup %1553  ;;  %314 = vmatprep.subr.bf16.mxu1 %v207_v42 }
  0x47   :  { %v188_v0 = vmul.f32 %v1554_v18, %v1881_v30  ;;  %v192_v4 = vmul.f32 %v1554_v18, %v1884_v32  ;;  %v180_v16 = vmul.f32 %v1554_v18, %v1875_v28  ;;  %v184_v1 = vmul.f32 %v1554_v18, %v1878_v29  ;;  %v1514_v29 = vld [vmem:[%s2180_s1] sm:$0xff]   ;;  %v1515_v32 = vld [vmem:[%s2180_s1 + $0x8] sm:$0xff]  }
  0x48   :  { %v1556_v20 = vpop.eup %1555 }
  0x49   :  { %v204_v62 = vpack.c.bf16 %v192_v4, %v188_v0  ;;  %v190_v63 = vmul.f32 %v1556_v20, %v1901_v40  ;;  %v194_v47 = vmul.f32 %v1556_v20, %v1904_v41  ;;  %v182_v48 = vmul.f32 %v1556_v20, %v1895_v37  ;;  %v1516_v37 = vld [vmem:[%s2182_s3 + $0x78] sm:$0xff]  }
  0x4a   :  { %v186_v10 = vmul.f32 %v1556_v20, %v1898_v22  ;;  %v200_v30 = vpack.c.bf16 %v184_v1, %v180_v16  ;;  %v1517_v22 = vld [vmem:[%s2182_s3 + $0xf8] sm:$0xff]  }
  0x4b   :  { %262 = vmatpush1.bf16.msra.mxu0 %v204_v62  ;;  %v206_v26 = vpack.c.bf16 %v194_v47, %v190_v63  ;;  %v1518_v40 = vld [vmem:[%s2182_s3 + $0x38] sm:$0xff]  }
  0x4c   :  { %263 = vmatprep.subr.bf16.mxu0 %v201_v46  ;;  %v202_v28 = vpack.c.bf16 %v186_v10, %v182_v48  ;;  %v1519_v41 = vld [vmem:[%s2182_s3 + $0xb8] sm:$0xff]  }
  0x4d   :  { %315 = vmatpush1.bf16.msra.mxu1 %v206_v26 }
  0x4e   :  { %316 = vmatprep.subr.bf16.mxu1 %v203_v12 }
  0x4f   :  { %264 = vmatpush1.bf16.msra.mxu0 %v200_v30 }
  0x50   :  { %1462 = vmatprep.subr.bf16.mxu0 %v1516_v37 }
  0x51   :  { %317 = vmatpush1.bf16.msra.mxu1 %v202_v28 }
  0x52   :  { %1417 = vmatmul.mubr.msk.bf16.vlgmr.msra.gmra.mxu0 %vm242_vm0, %v1514_v29  ;;  %1484 = vmatprep.subr.bf16.mxu1 %v1517_v22 }
  0x53   :  { %291 = vmatprep.mubr.bf16.mxu0 %v1651_v7  ;;  %1463 = vmatpush3.bf16.msra.mxu0 %v1518_v40 }
  0x54   :  { %1419 = vmatmul.mubr.msk.bf16.vlgmr.msra.gmra.mxu1 %vm242_vm0, %v1514_v29  ;;  %1464 = vmatprep.subr.bf16.mxu0 %v1520_v49 }
  0x55   :  { %344 = vmatprep.mubr.bf16.mxu1 %v1651_v7  ;;  %1485 = vmatpush3.bf16.msra.mxu1 %v1519_v41 }
  0x56   :  { %1486 = vmatprep.subr.bf16.mxu1 %v1521_v50 }
  0x57   :  { %1465 = vmatpush3.bf16.msra.mxu0 %v1522_v51 }
  0x58   :  { %1466 = vmatprep.subr.bf16.mxu0 %v1524_v53 }
  0x59   :  { %1487 = vmatpush3.bf16.msra.mxu1 %v1523_v52 }
  0x5a   :  { %1418 = vmatmul.mubr.msk.bf16.gmra.mxu0 %vm242_vm0, %v1515_v32  ;;  %1488 = vmatprep.subr.bf16.mxu1 %v1525_v54 }
  0x5b   :  { %1467 = vmatpush3.bf16.msra.mxu0 %v1526_v55 }
  0x5c   :  { %1420 = vmatmul.mubr.msk.bf16.gmra.mxu1 %vm242_vm0, %v1515_v32  ;;  %1468 = vmatprep.subr.bf16.mxu0 %v1528_v57 }
  0x5d   :  { %1489 = vmatpush3.bf16.msra.mxu1 %v1527_v56 }
  0x5e   :  { %1490 = vmatprep.subr.bf16.mxu1 %v1529_v58 }
  0x5f   :  { %1469 = vmatpush3.bf16.msra.mxu0 %v1530_v59 }
  0x60   :  { %1470 = vmatprep.subr.bf16.mxu0 %v1532_v61 }
  0x61   :  { %1491 = vmatpush3.bf16.msra.mxu1 %v1531_v60 }
  0x62   :  { %1492 = vmatprep.subr.bf16.mxu1 %v1533_v2 }
  0x63   :  { %1471 = vmatpush3.bf16.msra.mxu0 %v1534_v3 }
  0x64   :  { %1472 = vmatprep.subr.bf16.mxu0 %v1536_v5 }
  0x65   :  { %1493 = vmatpush3.bf16.msra.mxu1 %v1535_v8 }
  0x66   :  { %1494 = vmatprep.subr.bf16.mxu1 %v1537_v6 }
  0x67   :  { %1473 = vmatpush3.bf16.msra.mxu0 %v1538_v9 }
  0x68   :  { %1474 = vmatprep.subr.bf16.mxu0 %v1540_v17 }
  0x69   :  { %1495 = vmatpush3.bf16.msra.mxu1 %v1539_v13 }
  0x6a   :  { %1496 = vmatprep.subr.bf16.mxu1 %v1541_v21 }
  0x6b   :  { %1475 = vmatpush3.bf16.msra.mxu0 %v1542_v23 }
  0x6c   :  { %1476 = vmatprep.subr.bf16.mxu0 %v1544_v25 }
  0x6d   :  { %1497 = vmatpush3.bf16.msra.mxu1 %v1543_v24 }
  0x6e   :  { %1498 = vmatprep.subr.bf16.mxu1 %v1545_v27 }
  0x6f   :  { %1477 = vmatpush3.bf16.msra.mxu0 %v1546_v31 }
  0x71   :  { %1499 = vmatpush3.bf16.msra.mxu1 %v1547_v33 }
  0x84   :  { %v215_v34 = vpop.permute.xlu1 %214 }
  0x86   :  { %v225_v19 = vpop.permute.xlu0 %224 }
  0x88   :  { %v220_v14 = vpop.permute.xlu1 %219 }
  0x8a   :  { %v230_v22 = vpop.permute.xlu0 %229 }
 0x112   :  { %v283_v35 = vpop.f32.mrf.mxu0 }
 0x113   :  { %v2038_v36 = vadd.f32 %v283_v35, %v215_v34 }
 0x114   :  { %v285_v11 = vpop.f32.mrf.mxu0  ;;  %v336_v38 = vpop.f32.mrf.mxu1 }
 0x115   :  { %v371_v15 = vmul.f32 0.70710677, %v2038_v36  ;;  %v2041_v39 = vadd.f32 %v285_v11, %v215_v34  ;;  %v2043_v42 = vadd.f32 %v336_v38, %v215_v34  ;;  %v355_v24 = vmul.f32 0.5, %v2038_v36 }
 0x116   :  { %v287_v43 = vpop.f32.mrf.mxu0  ;;  %v338_v18 = vpop.f32.mrf.mxu1 }
 0x117   :  { %1557 = verf.f32 %v371_v15  ;;  %v372_v44 = vmul.f32 0.70710677, %v2041_v39  ;;  %v288_v45 = vadd.f32 %v287_v43, %v220_v14  ;;  %v373_v0 = vmul.f32 0.70710677, %v2043_v42 }
 0x118   :  { %v2047_v4 = vadd.f32 %v338_v18, %v215_v34  ;;  %v289_v16 = vpop.f32.mrf.mxu0  ;;  %v340_v46 = vpop.f32.mrf.mxu1  ;;  %v356_v35 = vmul.f32 0.5, %v2041_v39  ;;  %v357_v18 = vmul.f32 0.5, %v2043_v42 }
 0x119   :  { %1559 = verf.f32 %v372_v44  ;;  %v375_v1 = vmul.f32 0.70710677, %v288_v45  ;;  %v2049_v20 = vadd.f32 %v289_v16, %v220_v14  ;;  %v2052_v63 = vadd.f32 %v340_v46, %v220_v14 }
 0x11a   :  { %1561 = verf.f32 %v373_v0  ;;  %v374_v62 = vmul.f32 0.70710677, %v2047_v4  ;;  %v293_v47 = vpop.f32.mrf.mxu0  ;;  %v342_v10 = vpop.f32.mrf.mxu1  ;;  %v359_v27 = vmul.f32 0.5, %v288_v45  ;;  %v358_v39 = vmul.f32 0.5, %v2047_v4 }
 0x11b   :  { %1563 = verf.f32 %v375_v1  ;;  %v376_v48 = vmul.f32 0.70710677, %v2049_v20  ;;  %v2055_v12 = vadd.f32 %v293_v47, %v225_v19  ;;  %v377_v30 = vmul.f32 0.70710677, %v2052_v63 }
 0x11c   :  { %1565 = verf.f32 %v374_v62  ;;  %v2058_v26 = vadd.f32 %v342_v10, %v220_v14  ;;  %v295_v28 = vpop.f32.mrf.mxu0  ;;  %v346_v32 = vpop.f32.mrf.mxu1  ;;  %v360_v38 = vmul.f32 0.5, %v2049_v20  ;;  %v361_v36 = vmul.f32 0.5, %v2052_v63 }
 0x11d   :  { %1567 = verf.f32 %v376_v48  ;;  %v379_v29 = vmul.f32 0.70710677, %v2055_v12  ;;  %v2061_v37 = vadd.f32 %v295_v28, %v225_v19  ;;  %v2064_v41 = vadd.f32 %v346_v32, %v225_v19 }
 0x11e   :  { %1569 = verf.f32 %v377_v30  ;;  %v378_v40 = vmul.f32 0.70710677, %v2058_v26  ;;  %v297_v49 = vpop.f32.mrf.mxu0  ;;  %v348_v51 = vpop.f32.mrf.mxu1  ;;  %v362_v42 = vmul.f32 0.5, %v2058_v26 }
 0x11f   :  { %1571 = verf.f32 %v379_v29  ;;  %v380_v50 = vmul.f32 0.70710677, %v2061_v37  ;;  %v2067_v52 = vadd.f32 %v297_v49, %v230_v22  ;;  %v381_v53 = vmul.f32 0.70710677, %v2064_v41 }
 0x120   :  { %1573 = verf.f32 %v378_v40  ;;  %v2070_v54 = vadd.f32 %v348_v51, %v225_v19  ;;  %v299_v55 = vpop.f32.mrf.mxu0  ;;  %v350_v57 = vpop.f32.mrf.mxu1 }
 0x121   :  { %1575 = verf.f32 %v380_v50  ;;  %v383_v56 = vmul.f32 0.70710677, %v2067_v52  ;;  %v300_v58 = vadd.f32 %v299_v55, %v230_v22  ;;  %v2074_v60 = vadd.f32 %v350_v57, %v230_v22 }
 0x122   :  { %1577 = verf.f32 %v381_v53  ;;  %v382_v59 = vmul.f32 0.70710677, %v2070_v54  ;;  %v352_v2 = vpop.f32.mrf.mxu1  ;;  %v367_v26 = vmul.f32 0.5, %v2067_v52  ;;  %v364_v55 = vmul.f32 0.5, %v2061_v37 }
 0x123   :  { %1579 = verf.f32 %v383_v56  ;;  %v384_v61 = vmul.f32 0.70710677, %v300_v58  ;;  %v385_v8 = vmul.f32 0.70710677, %v2074_v60  ;;  %v2077_v5 = vadd.f32 %v352_v2, %v230_v22 }
 0x124   :  { %v1558_v3 = vpop.eup %1557  ;;  %1581 = verf.f32 %v382_v59  ;;  %v368_v56 = vmul.f32 0.5, %v300_v58  ;;  %v363_v59 = vmul.f32 0.5, %v2055_v12  ;;  %v365_v37 = vmul.f32 0.5, %v2064_v41  ;;  %v784_v41 = vld [vmem:[%s2183_s4 + $0x18] sm:$0xff] }
 0x125   :  { %1583 = verf.f32 %v384_v61  ;;  %v386_v9 = vmul.f32 0.70710677, %v2077_v5  ;;  %v403_v17 = vadd.f32 1.0, %v1558_v3  ;;  %899 = vmatprep.subr.mxu1 %v784_v41 }
 0x126   :  { %v1560_v6 = vpop.eup %1559  ;;  %1585 = verf.f32 %v385_v8 }
 0x127   :  { %v1562_v13 = vpop.eup %1561  ;;  %1587 = verf.f32 %v386_v9  ;;  %v404_v25 = vadd.f32 1.0, %v1560_v6  ;;  %v2082_v14 = vmul.f32 %v403_v17, %v355_v24 }
 0x128   :  { %v1564_v21 = vpop.eup %1563  ;;  %v405_v34 = vadd.f32 1.0, %v1562_v13  ;;  %v369_v13 = vmul.f32 0.5, %v2074_v60  ;;  %v781_v60 = vld [vmem:[%s2183_s4] sm:$0xff] }
 0x129   :  { %v1566_v23 = vpop.eup %1565  ;;  %v407_v31 = vadd.f32 1.0, %v1564_v21  ;;  %v2089_v16 = vmul.f32 %v404_v25, %v356_v35  ;;  %v366_v21 = vmul.f32 0.5, %v2070_v54  ;;  %v782_v54 = vld [vmem:[%s2183_s4 + $0x8] sm:$0xff] }
 0x12a   :  { %v1568_v33 = vpop.eup %1567  ;;  %v406_v19 = vadd.f32 1.0, %v1566_v23  ;;  %v2096_v20 = vmul.f32 %v405_v34, %v357_v18  ;;  %v370_v23 = vmul.f32 0.5, %v2077_v5  ;;  %822 = vmatprep.subr.mxu0 %v782_v54  ;;  %v783_v5 = vld [vmem:[%s2183_s4 + $0x10] sm:$0xff] }
 0x12b   :  { %v1570_v11 = vpop.eup %1569  ;;  %v2084_v15 = vmul.f32 %v407_v31, %v359_v27  ;;  %v408_v43 = vadd.f32 1.0, %v1568_v33 }
 0x12c   :  { %v1572_v44 = vpop.eup %1571  ;;  %v409_v45 = vadd.f32 1.0, %v1570_v11  ;;  %v2103_v28 = vmul.f32 %v406_v19, %v358_v39  ;;  %v1652_v11 = vmov 0.0  }
 0x12d   :  { %v1574_v0 = vpop.eup %1573  ;;  %v435_v1 = vpack.c.bf16 %v2084_v15, %v2082_v14  ;;  %v2094_v46 = vmul.f32 %v408_v43, %v360_v38  ;;  %v411_v50 = vadd.f32 1.0, %v1572_v44  ;;  %v953_v38 = vld [vmem:[%s2185_s6 + $0x8] sm:$0xff]  ;;  %v1215_v43 = vld [vmem:[%s2188_s9] sm:$0xff] }
 0x12e   :  { %v1576_v62 = vpop.eup %1575  ;;  %v2098_v47 = vmul.f32 %v409_v45, %v361_v36  ;;  %v410_v48 = vadd.f32 1.0, %v1574_v0  ;;  %961 = vperm.xlu1 %1513, %v953_v38  }
 0x12f   :  { %v1578_v63 = vpop.eup %1577  ;;  %v436_v10 = vpack.c.bf16 %v2094_v46, %v2089_v16  ;;  %v412_v22 = vadd.f32 1.0, %v1576_v62  ;;  %v427_v52 = vmul.f32 %v411_v50, %v363_v59  ;;  %v957_v16 = vpop.permute.xlu0 %956 }
 0x130   :  { %v1580_v30 = vpop.eup %1579  ;;  %v437_v4 = vpack.c.bf16 %v2098_v47, %v2096_v20  ;;  %v2107_v29 = vmul.f32 %v410_v48, %v362_v42  ;;  %v413_v6 = vadd.f32 1.0, %v1578_v63 }
 0x131   :  { %v1582_v32 = vpop.eup %1581  ;;  %v415_v40 = vadd.f32 1.0, %v1580_v30  ;;  %v428_v9 = vmul.f32 %v412_v22, %v364_v55 }
 0x132   :  { %v1584_v49 = vpop.eup %1583  ;;  %v438_v51 = vpack.c.bf16 %v2107_v29, %v2103_v28  ;;  %v414_v61 = vadd.f32 1.0, %v1582_v32  ;;  %v429_v33 = vmul.f32 %v413_v6, %v365_v37  ;;  %1218 = vperm.xlu1 %1513, %v1215_v43  }
 0x133   :  { %v1586_v53 = vpop.eup %1585  ;;  %v416_v57 = vadd.f32 1.0, %v1584_v49  ;;  %v431_v2 = vmul.f32 %v415_v40, %v367_v26 }
 0x134   :  { %v417_v3 = vadd.f32 1.0, %v1586_v53  ;;  %v1588_v8 = vpop.eup %1587  ;;  %v430_v12 = vmul.f32 %v414_v61, %v366_v21 }
 0x135   :  { %v432_v17 = vmul.f32 %v416_v57, %v368_v56  ;;  %v418_v24 = vadd.f32 1.0, %v1588_v8  ;;  %v439_v27 = vpack.c.bf16 %v431_v2, %v427_v52  ;;  %v1548_v8 = vld [vmem:[%s2184_s5] sm:$0xff]  }
 0x136   :  { %v433_v58 = vmul.f32 %v417_v3, %v369_v13 }
 0x137   :  { %v440_v25 = vpack.c.bf16 %v432_v17, %v428_v9  ;;  %v434_v31 = vmul.f32 %v418_v24, %v370_v23 }
 0x138   :  { %v441_v35 = vpack.c.bf16 %v433_v58, %v429_v33 }
 0x139   :  { %731 = vmatprep.mubr.bf16.mxu0 %v440_v25  ;;  %v442_v34 = vpack.c.bf16 %v434_v31, %v430_v12 }
 0x13a   :  { %732 = vmatmul.mubr.bf16.vlgmr.msra.gmra.mxu0 %v439_v27 }
 0x13b   :  { %772 = vmatprep.mubr.bf16.mxu1 %v442_v34  ;;  %823 = vmatpush1.msra.mxu0 %v781_v60 }
 0x13c   :  { %773 = vmatmul.mubr.bf16.vlgmr.msra.gmra.mxu1 %v441_v35  ;;  %856 = vmatprep.mubr.f32.mxu0 %v1652_v11 }
 0x13d   :  { %900 = vmatpush1.msra.mxu1 %v783_v5  ;;  %933 = vmatprep.mubr.f32.mxu1 %v1652_v11 }
 0x1a9   :  { %v962_v15 = vpop.permute.xlu1 %961 }
 0x1fa   :  { %v1478_v44 = vpop.f32.mrf.mxu0 }
 0x1fc   :  { %v1479_v18 = vpop.f32.mrf.mxu0  ;;  %v1500_v19 = vpop.f32.mrf.mxu1 }
 0x1fd   :  { %v1480_v36 = vadd.f32 %v1479_v18, %v1478_v44 }
 0x1fe   :  { %v1481_v45 = vpop.f32.mrf.mxu0  ;;  %v1501_v0 = vpop.f32.mrf.mxu1 }
 0x1ff   :  { %v1502_v39 = vadd.f32 %v1501_v0, %v1500_v19 }
 0x200   :  { %v1482_v62 = vpop.f32.mrf.mxu0  ;;  %v1503_v42 = vpop.f32.mrf.mxu1 }
 0x201   :  { %v775_v48 = vadd.f32 %v1502_v39, %v1480_v36  ;;  %v1483_v63 = vadd.f32 %v1482_v62, %v1481_v45 }
 0x202   :  { %v1504_v30 = vpop.f32.mrf.mxu1 }
 0x203   :  { %v1505_v32 = vadd.f32 %v1504_v30, %v1503_v42  ;;  %1453 = vmatmul.mubr.msk.f32.vlgmr.msra.gmra.mxu0 %vm785_vm1, %v775_v48  ;;  %1455 = vmatmul.mubr.msk.f32.vlgmr.msra.gmra.mxu1 %vm785_vm1, %v775_v48 }
 0x204   :  { %862 = vmatprep.mubr.f32.mxu0 %v1652_v11  ;;  %939 = vmatprep.mubr.f32.mxu1 %v1652_v11 }
 0x205   :  { %v778_v22 = vadd.f32 %v1505_v32, %v1483_v63 }
 0x207   :  { %1454 = vmatmul.mubr.msk.f32.gmra.mxu0 %vm785_vm1, %v778_v22  ;;  %1456 = vmatmul.mubr.msk.f32.gmra.mxu1 %vm785_vm1, %v778_v22 }
 0x208   :  { %1004 = vmatprep.mubr.bf16.mxu0 %v1651_v7  ;;  %1047 = vmatprep.mubr.bf16.mxu1 %v1651_v7 }
 0x2c3   :  { %v858_v40 = vpop.f32.mrf.mxu0  ;;  %v935_v49 = vpop.f32.mrf.mxu1 }
 0x2c5   :  { %v860_v50 = vpop.f32.mrf.mxu0  ;;  %v937_v26 = vpop.f32.mrf.mxu1 }
 0x2c7   :  { %v864_v53 = vpop.f32.mrf.mxu0  ;;  %v941_v55 = vpop.f32.mrf.mxu1 }
 0x2c8   :  { %v946_v2 = vpack.c.bf16 %v864_v53, %v858_v40  ;;  %v948_v3 = vpack.c.bf16 %v941_v55, %v935_v49 }
 0x2c9   :  { %v866_v56 = vpop.f32.mrf.mxu0  ;;  %v943_v57 = vpop.f32.mrf.mxu1 }
 0x2ca   :  { %v947_v59 = vpack.c.bf16 %v866_v56, %v860_v50  ;;  %v949_v61 = vpack.c.bf16 %v943_v57, %v937_v26 }
 0x2cc   :  { %984 = vmatprep.subr.bf16.mxu0 %v947_v59  ;;  %1027 = vmatprep.subr.bf16.mxu1 %v949_v61 }
 0x2cd   :  { %985 = vmatpush1.bf16.msra.mxu0 %v946_v2  ;;  %1028 = vmatpush1.bf16.msra.mxu1 %v948_v3  ;;  %v1098_v3 = vld [vmem:[%s2186_s7] sm:$0xf]  ;;  %s1654_s7 = smov [#allocation3]  }
 0x2ce   :  { %986 = vmatprep.subr.bf16.mxu0 %v436_v10  ;;  %1029 = vmatprep.subr.bf16.mxu1 %v438_v51  ;;  %s1395_s26 = sshll.u32 %s1654_s7, 4  ;;  %s1396_s26 = int_to_ptr.vmem [resolvable:$true] %s1395_s26 }
 0x2cf   :  { %s1629_s27 = scalar_lea.vmem %s1396_s26, 128  ;;  %p1634_p1 = scmp.lt.s32.totalorder %s1396_s26, %s1396_s26 }
 0x2d0   :  { %p1630_p0 = scmp.ne.s32.totalorder %s1396_s26, %s1629_s27  ;;  %p1635_p2 = scmp.lt.s32.totalorder %s1629_s27, %s1629_s27 }
 0x2d1   :  { %987 = vmatpush1.bf16.msra.mxu0 %v435_v1  ;;  %1030 = vmatpush1.bf16.msra.mxu1 %v437_v4 }
 0x2d2   :  { %p1636_p3 = por %p1635_p2, %p1634_p1 }
 0x2d4   :  { %1458 = vmatmul.mubr.msk.bf16.vlgmr.msra.gmra.mxu0 %vm242_vm0, %v1548_v8  ;;  %1459 = vmatmul.mubr.msk.bf16.vlgmr.msra.gmra.mxu1 %vm242_vm0, %v1548_v8  ;;  %v1107_v8 = vpop.permute.xlu0 %1106  ;;  %p1637_p4 = pnand %p1636_p3, %p1630_p0 }
 0x2d5   :  { %1145 = vmatprep.mubr.bf16.mxu0 %v1651_v7  ;;  %1186 = vmatprep.mubr.bf16.mxu1 %v1651_v7 }
 0x394   :  { %v1006_v46 = vpop.f32.mrf.mxu0  ;;  %v1049_v10 = vpop.f32.mrf.mxu1 }
 0x395   :  { %v1007_v28 = vadd.f32 %v1006_v46, %v957_v16  ;;  %v1050_v29 = vadd.f32 %v1049_v10, %v957_v16 }
 0x396   :  { %v1008_v51 = vpop.f32.mrf.mxu0  ;;  %v1051_v14 = vpop.f32.mrf.mxu1 }
 0x397   :  { %v1066_v1 = vmul.f32 0.70710677, %v1007_v28  ;;  %v1068_v6 = vmul.f32 0.70710677, %v1050_v29  ;;  %v1009_v20 = vadd.f32 %v1008_v51, %v957_v16  ;;  %v1052_v47 = vadd.f32 %v1051_v14, %v957_v16 }
 0x398   :  { %v1010_v4 = vpop.f32.mrf.mxu0  ;;  %v1053_v9 = vpop.f32.mrf.mxu1  ;;  %v1058_v60 = vmul.f32 0.5, %v1007_v28  ;;  %v1060_v22 = vmul.f32 0.5, %v1050_v29 }
 0x399   :  { %v1011_v13 = vadd.f32 %v1010_v4, %v962_v15  ;;  %v1054_v17 = vadd.f32 %v1053_v9, %v962_v15  ;;  %1589 = verf.f32 %v1066_v1  ;;  %v1067_v52 = vmul.f32 0.70710677, %v1009_v20 }
 0x39a   :  { %v1012_v21 = vpop.f32.mrf.mxu0  ;;  %v1055_v7 = vpop.f32.mrf.mxu1  ;;  %1591 = verf.f32 %v1068_v6  ;;  %v1069_v23 = vmul.f32 0.70710677, %v1052_v47  ;;  %v1059_v5 = vmul.f32 0.5, %v1009_v20  ;;  %v1061_v48 = vmul.f32 0.5, %v1052_v47 }
 0x39b   :  { %v1070_v24 = vmul.f32 0.70710677, %v1011_v13  ;;  %1593 = verf.f32 %v1067_v52  ;;  %v1072_v37 = vmul.f32 0.70710677, %v1054_v17  ;;  %v1013_v58 = vadd.f32 %v1012_v21, %v962_v15 }
 0x39c   :  { %v1056_v25 = vadd.f32 %v1055_v7, %v962_v15  ;;  %1595 = verf.f32 %v1069_v23  ;;  %v1062_v19 = vmul.f32 0.5, %v1011_v13  ;;  %v1064_v39 = vmul.f32 0.5, %v1054_v17 }
 0x39d   :  { %1597 = verf.f32 %v1070_v24  ;;  %v1071_v12 = vmul.f32 0.70710677, %v1013_v58  ;;  %v1063_v62 = vmul.f32 0.5, %v1013_v58 }
 0x39e   :  { %1599 = verf.f32 %v1072_v37  ;;  %v1073_v27 = vmul.f32 0.70710677, %v1056_v25  ;;  %v1065_v30 = vmul.f32 0.5, %v1056_v25 }
 0x39f   :  { %1601 = verf.f32 %v1071_v12 }
 0x3a0   :  { %1603 = verf.f32 %v1073_v27 }
 0x3a6   :  { %v1590_v31 = vpop.eup %1589 }
 0x3a7   :  { %v1592_v33 = vpop.eup %1591  ;;  %v1082_v44 = vadd.f32 1.0, %v1590_v31 }
 0x3a8   :  { %v1594_v34 = vpop.eup %1593  ;;  %v1084_v0 = vadd.f32 1.0, %v1592_v33  ;;  %v1219_v33 = vpop.permute.xlu1 %1218 }
 0x3a9   :  { %v1596_v35 = vpop.eup %1595  ;;  %v1083_v11 = vadd.f32 1.0, %v1594_v34  ;;  %v1090_v26 = vmul.f32 %v1082_v44, %v1058_v60 }
 0x3aa   :  { %v1598_v54 = vpop.eup %1597  ;;  %v1085_v18 = vadd.f32 1.0, %v1596_v35  ;;  %v1092_v56 = vmul.f32 %v1084_v0, %v1060_v22 }
 0x3ab   :  { %v1600_v41 = vpop.eup %1599  ;;  %v1086_v38 = vadd.f32 1.0, %v1598_v54  ;;  %v1091_v40 = vmul.f32 %v1083_v11, %v1059_v5 }
 0x3ac   :  { %v1602_v43 = vpop.eup %1601  ;;  %v1088_v36 = vadd.f32 1.0, %v1600_v41  ;;  %v1093_v53 = vmul.f32 %v1085_v18, %v1061_v48  ;;  %v1255_v41 = vlaneseq }
 0x3ad   :  { %v1604_v45 = vpop.eup %1603  ;;  %v1087_v42 = vadd.f32 1.0, %v1602_v43  ;;  %v1094_v63 = vmul.f32 %v1086_v38, %v1062_v19 }
 0x3ae   :  { %v1089_v32 = vadd.f32 1.0, %v1604_v45  ;;  %v1096_v49 = vmul.f32 %v1088_v36, %v1064_v39  ;;  %v2161_v36 = vshrl.u32 %v1255_v41, 7  ;;  %vm1327_vm3 = vcmp.lt.s32.totalorder %v1255_v41, 256 }
 0x3af   :  { %v1095_v50 = vmul.f32 %v1087_v42, %v1063_v62  ;;  %v1099_v59 = vpack.c.bf16 %v1094_v63, %v1090_v26 }
 0x3b0   :  { %v1097_v55 = vmul.f32 %v1089_v32, %v1065_v30  ;;  %v1101_v2 = vpack.c.bf16 %v1096_v49, %v1092_v56  ;;  %v1257_v32 = vsub.s32 0, %v2161_v36  ;;  %v1253_v49 = vpop.permute.xlu0 %1252 }
 0x3b1   :  { %v1100_v57 = vpack.c.bf16 %v1095_v50, %v1091_v40 }
 0x3b2   :  { %v1102_v61 = vpack.c.bf16 %v1097_v55, %v1093_v53 }
 0x3b3   :  { %1127 = vmatprep.subr.bf16.mxu0 %v1100_v57 }
 0x3b4   :  { %1168 = vmatprep.subr.bf16.mxu1 %v1102_v61  ;;  %1128 = vmatpush1.bf16.msra.mxu0 %v1099_v59  ;;  %v1258_v59 = vrot.slane %v1253_v49, %v1257_v32 }
 0x3b5   :  { %1169 = vmatpush1.bf16.msra.mxu1 %v1101_v2 }
 0x3b7   :  { %1460 = vmatmul.mubr.msk.bf16.vlgmr.msra.gmra.mxu0 %vm1109_vm2, %v1098_v3 }
 0x3b8   :  { %1461 = vmatmul.mubr.msk.bf16.vlgmr.msra.gmra.mxu1 %vm1109_vm2, %v1098_v3 }
 0x477   :  { %v1147_v16 = vpop.f32.mrf.mxu0 }
 0x478   :  { %v1148_v46 = vadd.f32 %v1147_v16, %v1107_v8  ;;  %v1188_v10 = vpop.f32.mrf.mxu1 }
 0x479   :  { %v1189_v28 = vadd.f32 %v1188_v10, %v1107_v8  ;;  %v1149_v29 = vpop.f32.mrf.mxu0 }
 0x47a   :  { %v1199_v51 = vmul.f32 0.70710677, %v1148_v46  ;;  %v1150_v14 = vadd.f32 %v1149_v29, %v1107_v8  ;;  %v1190_v15 = vpop.f32.mrf.mxu1  ;;  %v1195_v7 = vmul.f32 0.5, %v1148_v46 }
 0x47b   :  { %v1201_v1 = vmul.f32 0.70710677, %v1189_v28  ;;  %v1191_v6 = vadd.f32 %v1190_v15, %v1107_v8  ;;  %v1151_v20 = vpop.f32.mrf.mxu0  ;;  %v1197_v37 = vmul.f32 0.5, %v1189_v28 }
 0x47c   :  { %1605 = verf.f32 %v1199_v51  ;;  %v1200_v47 = vmul.f32 0.70710677, %v1150_v14  ;;  %v1192_v4 = vpop.f32.mrf.mxu1  ;;  %v1196_v27 = vmul.f32 0.5, %v1150_v14 }
 0x47d   :  { %1607 = verf.f32 %v1201_v1  ;;  %v1202_v9 = vmul.f32 0.70710677, %v1191_v6  ;;  %v1152_v13 = vpop.f32.mrf.mxu0  ;;  %v1198_v35 = vmul.f32 0.5, %v1191_v6 }
 0x47e   :  { %1609 = verf.f32 %v1200_v47  ;;  %v1193_v17 = vpop.f32.mrf.mxu1 }
 0x47f   :  { %1611 = verf.f32 %v1202_v9 }
 0x489   :  { %v1606_v52 = vpop.eup %1605 }
 0x48a   :  { %v1608_v21 = vpop.eup %1607  ;;  %v1207_v23 = vadd.f32 1.0, %v1606_v52 }
 0x48b   :  { %v1610_v24 = vpop.eup %1609  ;;  %v1209_v58 = vadd.f32 1.0, %v1608_v21 }
 0x48c   :  { %v1612_v25 = vpop.eup %1611  ;;  %v1211_v12 = vmul.f32 %v1207_v23, %v1195_v7  ;;  %v1208_v31 = vadd.f32 1.0, %v1610_v24 }
 0x48d   :  { %v1213_v34 = vmul.f32 %v1209_v58, %v1197_v37  ;;  %v1210_v54 = vadd.f32 1.0, %v1612_v25 }
 0x48e   :  { %v1221_v60 = vmul.f32 %v1219_v33, %v1211_v12  ;;  %v1212_v5 = vmul.f32 %v1208_v31, %v1196_v27  ;;  %v1653_v31 = vmov 1966171168  }
 0x48f   :  { %v1223_v11 = vmul.f32 %v1219_v33, %v1213_v34  ;;  %v1214_v38 = vmul.f32 %v1210_v54, %v1198_v35 }
 0x490   :  { %v1225_v43 = vrot.slane %v1221_v60, 4  ;;  %v1222_v44 = vmul.f32 %v1219_v33, %v1212_v5 }
 0x491   :  { %v1237_v18 = vrot.slane %v1223_v11, 4  ;;  %v1224_v19 = vmul.f32 %v1219_v33, %v1214_v38  ;;  %v1311_v33 = vunpack.c.l.s4 %v1653_v31 }
 0x492   :  { %v1226_v45 = vadd.f32 %v1225_v43, %v1221_v60  ;;  %v1231_v0 = vrot.slane %v1222_v44, 4 }
 0x493   :  { %v1238_v39 = vadd.f32 %v1237_v18, %v1223_v11  ;;  %v1243_v62 = vrot.slane %v1224_v19, 4  ;;  %v1312_v11 = vunpack.c.0.s8 %v1311_v33 }
 0x494   :  { %v1227_v42 = vrot.slane %v1226_v45, 2  ;;  %v1232_v48 = vadd.f32 %v1231_v0, %v1222_v44 }
 0x495   :  { %v1239_v63 = vrot.slane %v1238_v39, 2  ;;  %v1244_v30 = vadd.f32 %v1243_v62, %v1224_v19 }
 0x496   :  { %v1228_v22 = vadd.f32 %v1227_v42, %v1226_v45  ;;  %v1233_v40 = vrot.slane %v1232_v48, 2 }
 0x497   :  { %v1240_v50 = vadd.f32 %v1239_v63, %v1238_v39  ;;  %v1245_v26 = vrot.slane %v1244_v30, 2 }
 0x498   :  { %v1229_v53 = vrot.slane %v1228_v22, 1  ;;  %v1234_v55 = vadd.f32 %v1233_v40, %v1232_v48  ;;  %v1315_v48 = vsub.s32 %v1312_v11, %v2161_v36 }
 0x499   :  { %v1241_v56 = vrot.slane %v1240_v50, 1  ;;  %v1246_v57 = vadd.f32 %v1245_v26, %v1244_v30 }
 0x49a   :  { %v1230_v61 = vadd.f32 %v1229_v53, %v1228_v22  ;;  %v1235_v2 = vrot.slane %v1234_v55, 1 }
 0x49b   :  { %v1242_v3 = vadd.f32 %v1241_v56, %v1240_v50  ;;  %v1247_v8 = vrot.slane %v1246_v57, 1 }
 0x49c   :  { %v2164_v16 = vadd.f32 %v1258_v59, %v1230_v61  ;;  %v1236_v46 = vadd.f32 %v1235_v2, %v1234_v55 }
 0x49d   :  { %v2166_v10 = vadd.f32 %v1258_v59, %v1242_v3  ;;  %v1248_v28 = vadd.f32 %v1247_v8, %v1246_v57 }
 0x49e   :  { %v1267_v29 = vand.u32 2147483647, %v2164_v16  ;;  %v1260_v51 = vadd.f32 %v1258_v59, %v1236_v46  ;;  %v1263_v54 = vmax.f32 %v2164_v16, 0.0 }
 0x49f   :  { %v1269_v14 = vand.u32 2147483647, %v2166_v10  ;;  %v1262_v15 = vadd.f32 %v1258_v59, %v1248_v28  ;;  %v1265_v38 = vmax.f32 %v2166_v10, 0.0 }
 0x4a0   :  { %v1271_v1 = vsub.f32 0.0, %v1267_v29  ;;  %v1268_v6 = vand.u32 2147483647, %v1260_v51  ;;  %v1264_v19 = vmax.f32 %v1260_v51, 0.0 }
 0x4a1   :  { %v1273_v20 = vsub.f32 0.0, %v1269_v14  ;;  %v1270_v47 = vand.u32 2147483647, %v1262_v15  ;;  %v1266_v39 = vmax.f32 %v1262_v15, 0.0 }
 0x4a2   :  { %v1275_v4 = vmul.f32 1.442695, %v1271_v1  ;;  %v1272_v9 = vsub.f32 0.0, %v1268_v6 }
 0x4a3   :  { %v1279_v13 = vmul.f32 1.442695, %v1273_v20  ;;  %v1274_v17 = vsub.f32 0.0, %v1270_v47 }
 0x4a4   :  { %1613 = vpow2.f32 %v1275_v4  ;;  %v1277_v52 = vmul.f32 1.442695, %v1272_v9 }
 0x4a5   :  { %1615 = vpow2.f32 %v1279_v13  ;;  %v1281_v21 = vmul.f32 1.442695, %v1274_v17 }
 0x4a6   :  { %1617 = vpow2.f32 %v1277_v52 }
 0x4a7   :  { %1619 = vpow2.f32 %v1281_v21 }
 0x4b1   :  { %v1614_v7 = vpop.eup %1613 }
 0x4b2   :  { %v1616_v23 = vpop.eup %1615  ;;  %v1283_v24 = vadd.f32 1.0, %v1614_v7 }
 0x4b3   :  { %v1618_v37 = vpop.eup %1617  ;;  %v1285_v58 = vadd.f32 1.0, %v1616_v23 }
 0x4b4   :  { %v1620_v25 = vpop.eup %1619  ;;  %1621 = vlog2.f32 %v1283_v24  ;;  %v1284_v12 = vadd.f32 1.0, %v1618_v37 }
 0x4b5   :  { %1623 = vlog2.f32 %v1285_v58  ;;  %v1286_v27 = vadd.f32 1.0, %v1620_v25 }
 0x4b6   :  { %1625 = vlog2.f32 %v1284_v12 }
 0x4b7   :  { %1627 = vlog2.f32 %v1286_v27 }
 0x4c1   :  { %v1622_v34 = vpop.eup %1621 }
 0x4c2   :  { %v1624_v35 = vpop.eup %1623  ;;  %v1288_v60 = vmul.f32 0.6931472, %v1622_v34 }
 0x4c3   :  { %v1626_v5 = vpop.eup %1625  ;;  %v1292_v43 = vmul.f32 0.6931472, %v1624_v35 }
 0x4c4   :  { %v1628_v44 = vpop.eup %1627  ;;  %v1295_v18 = vadd.f32 %v1288_v60, %v1263_v54  ;;  %v1290_v45 = vmul.f32 0.6931472, %v1626_v5 }
 0x4c5   :  { %v1297_v0 = vadd.f32 %v1292_v43, %v1265_v38  ;;  %v1294_v62 = vmul.f32 0.6931472, %v1628_v44 }
 0x4c6   :  { %v1296_v42 = vadd.f32 %v1290_v45, %v1264_v19  ;;  %v1299_v30 = vsub.f32 0.0, %v1295_v18  ;;  %v1303_v32 = vsub.f32 %v2164_v16, %v1295_v18 }
 0x4c7   :  { %v1298_v63 = vadd.f32 %v1294_v62, %v1266_v39  ;;  %v1301_v49 = vsub.f32 0.0, %v1297_v0  ;;  %v1305_v50 = vsub.f32 %v2166_v10, %v1297_v0 }
 0x4c8   :  { %v1300_v22 = vsub.f32 0.0, %v1296_v42  ;;  %v1304_v40 = vsub.f32 %v1260_v51, %v1296_v42 }
 0x4c9   :  { %v1302_v26 = vsub.f32 0.0, %v1298_v63  ;;  %v1306_v53 = vsub.f32 %v1262_v15, %v1298_v63 }
 0x4ca   :  { %v1332_v55 = vcombine.low %v1303_v32, %v1304_v40  ;;  %v1309_v56 = vcombine.low %v1299_v30, %v1300_v22 }
 0x4cb   :  { %v1372_v57 = vcombine.low %v1305_v50, %v1306_v53  ;;  %v1352_v59 = vcombine.low %v1301_v49, %v1302_v26 }
 0x4cc   :  { %v1316_v61 = vrot.slane %v1309_v56, %v1315_v48  ;;  %v1339_v2 = vrot.slane %v1332_v55, %v1315_v48 }
 0x4cd   :  { %v1359_v36 = vrot.slane %v1352_v59, %v1315_v48  ;;  %v1379_v3 = vrot.slane %v1372_v57, %v1315_v48 }
 0x4ce   :  { %v1323_v8 = vrot.slane %v1316_v61, %v1315_v48  ;;  %v1346_v16 = vrot.slane %v1339_v2, %v1315_v48 }
 0x4cf   :  { %v1366_v46 = vrot.slane %v1359_v36, %v1315_v48  ;;  %v1386_v28 = vrot.slane %v1379_v3, %v1315_v48 }
 0x4d0   :  { %1329 = vst.msk [vmem:[#allocation3] ss:$2 sm:$0x3] %vm1327_vm3, %v1323_v8  ;;  %1349 = vst.msk [vmem:[#allocation3 + $0x1] ss:$2 sm:$0x3] %vm1327_vm3, %v1346_v16 }
 0x4d1   :  { %1369 = vst.msk [vmem:[#allocation3 + $0x4] ss:$2 sm:$0x3] %vm1327_vm3, %v1366_v46  ;;  %1389 = vst.msk [vmem:[#allocation3 + $0x5] ss:$2 sm:$0x3] %vm1327_vm3, %v1386_v28 }
 0x4d2   :  { %1640 = shalt.err (!%p1637_p4)
}
 0x4d3   :  { %s1655_s28 = smov 64   ;;  %s1656_s29 = smov 4  }
 0x4d4   :  { %1401 = dma.vmem_to_hbm [thread:$0]  %s1396_s26, 128, %s2190_s11, [#allocation4], %s1655_s28, %s1655_s28, %s1656_s29  }
 0x4d5   :  { %1649 = dma.done.wait [#allocation4], 128  }
 0x4d6   :  { %1650 = vsyncadd [#allocation4], 4294967168 }
 0x4d7   :  { %1405 = vsyncpa [#allocation4], 1 }

// kernel: tpu_custom_call.1
= control target key start
LH: loop header
LB: loop body
LE: loop exit
PB: predicated region body
PF: predicated region fallthrough
CT: control target
= control target key end

     0   :  { %s2179_s0 = inlined_call_operand.vmem [shape: f32[2,32,256], index: 0, kind: input, shape index: {}]   ;;  %s2180_s1 = inlined_call_operand.vmem [shape: bf16[32,32], index: 1, kind: input, shape index: {}]   ;;  %s2181_s2 = inlined_call_operand.vmem [shape: f32[32,1], index: 2, kind: input, shape index: {}]   ;;  %s2182_s3 = inlined_call_operand.vmem [shape: bf16[512,8], index: 3, kind: input, shape index: {}]   ;;  %s2183_s4 = inlined_call_operand.vmem [shape: f32[8,512], index: 4, kind: input, shape index: {}]   ;;  %s2184_s5 = inlined_call_operand.vmem [shape: bf16[16,32], index: 5, kind: input, shape index: {}]   ;;  %s2185_s6 = inlined_call_operand.vmem [shape: f32[16,1], index: 6, kind: input, shape index: {}]   ;;  %s2186_s7 = inlined_call_operand.vmem [shape: bf16[8,16], index: 7, kind: input, shape index: {}]   ;;  %s2187_s8 = inlined_call_operand.vmem [shape: f32[8,1], index: 8, kind: input, shape index: {}]   ;;  %s2188_s9 = inlined_call_operand.vmem [shape: f32[8,1], index: 9, kind: input, shape index: {}]   ;;  %s2189_s10 = inlined_call_operand.<no memory space> [shape: f32[1,1], index: 10, kind: input, shape index: {}]   ;;  %s2190_s11 = inlined_call_operand.hbm [shape: f32[2,2,256], index: 11, kind: output, shape index: {}]  }
   0x1   :  { %v16_v0 = vstv %s2189_s10 }
   0x2   :  { %17 = vst [vmem:[#allocation2] sm:$0x1] %v16_v0 }
   0x3   :  { %v1723_v1 = vld [vmem:[%s2179_s0 + $0x8] sm:$0xff]  ;;  %v1728_v2 = vld [vmem:[%s2179_s0 + $0x18] sm:$0xff]  ;;  %v1651_v7 = vmov 0   ;;  %v1764_v11 = vld [vmem:[%s2179_s0] sm:$0xff] }
   0x4   :  { %v1733_v3 = vld [vmem:[%s2179_s0 + $0x28] sm:$0xff]  ;;  %v68_v4 = vadd.f32 %v1728_v2, %v1723_v1  ;;  %v1745_v6 = vld [vmem:[%s2179_s0 + $0x58] sm:$0xff]  ;;  %281 = vmatprep.mubr.bf16.mxu0 %v1651_v7  ;;  %334 = vmatprep.mubr.bf16.mxu1 %v1651_v7  ;;  %v1775_v14 = vld [vmem:[%s2179_s0 + $0x10] sm:$0xff] }
   0x5   :  { %v1740_v5 = vld [vmem:[%s2179_s0 + $0x48] sm:$0xff]  ;;  %v1752_v8 = vld [vmem:[%s2179_s0 + $0x38] sm:$0xff]  ;;  %1512 = vset.pattern.permute.xlu0 %v1651_v7  ;;  %1513 = vset.pattern.permute.xlu1 %v1651_v7  ;;  %v1780_v15 = vld [vmem:[%s2179_s0 + $0x20] sm:$0xff]  ;;  %v59_v17 = vadd.f32 %v1775_v14, %v1764_v11 }
   0x6   :  { %v1757_v9 = vld [vmem:[%s2179_s0 + $0x68] sm:$0xff]  ;;  %v86_v10 = vadd.f32 %v1745_v6, %v1740_v5  ;;  %v69_v12 = vadd.f32 %v68_v4, %v1733_v3  ;;  %v1414_v13 = vld [vmem:[%s2179_s0 + $0x78] sm:$0xff]  ;;  %v1788_v18 = vld [vmem:[%s2179_s0 + $0x40] sm:$0xff] }
   0x7   :  { %v1793_v19 = vld [vmem:[%s2179_s0 + $0x50] sm:$0xff]  ;;  %v1798_v20 = vld [vmem:[%s2179_s0 + $0x60] sm:$0xff]  ;;  %v60_v25 = vadd.f32 %v59_v17, %v1780_v15  ;;  %v211_v35 = vld [vmem:[%s2181_s2 + $0x18] sm:$0xff] }
   0x8   :  { %v87_v16 = vadd.f32 %v1757_v9, %v86_v10  ;;  %v70_v21 = vadd.f32 %v69_v12, %v1752_v8  ;;  %v1804_v22 = vld [vmem:[%s2179_s0 + $0x30] sm:$0xff]  ;;  %v77_v23 = vadd.f32 %v1793_v19, %v1788_v18  ;;  %v208_v32 = vld [vmem:[%s2181_s2] sm:$0xff]  ;;  %v209_v38 = vld [vmem:[%s2181_s2 + $0x8] sm:$0xff] }
   0x9   :  { %v1812_v26 = vld [vmem:[%s2179_s0 + $0x70] sm:$0xff]  ;;  %v61_v31 = vadd.f32 %v60_v25, %v1804_v22  ;;  %214 = vperm.xlu1 %1513, %v208_v32   ;;  %v952_v43 = vld [vmem:[%s2185_s6] sm:$0xff] }
   0xa   :  { %v88_v24 = vadd.f32 %v1414_v13, %v87_v16  ;;  %v71_v27 = vrot.slane %v70_v21, 4  ;;  %v78_v28 = vadd.f32 %v1798_v20, %v77_v23  ;;  %v210_v29 = vld [vmem:[%s2181_s2 + $0x10] sm:$0xff]  ;;  %v1103_v52 = vld [vmem:[%s2187_s8] sm:$0xff] }
   0xb   :  { %224 = vperm.xlu0 %1512, %v210_v29   ;;  %v62_v37 = vrot.slane %v61_v31, 4  ;;  %v1249_v58 = vld [vmem:[#allocation2] sm:$0x1] }
   0xc   :  { %v89_v30 = vrot.slane %v88_v24, 4  ;;  %v72_v33 = vadd.f32 %v71_v27, %v70_v21  ;;  %v79_v34 = vadd.f32 %v1812_v26, %v78_v28 }
   0xd   :  { %v63_v42 = vadd.f32 %v62_v37, %v61_v31  ;;  %219 = vperm.xlu1 %1513, %v209_v38  }
   0xe   :  { %v90_v36 = vadd.f32 %v89_v30, %v88_v24  ;;  %v73_v39 = vrot.slane %v72_v33, 2  ;;  %v80_v40 = vrot.slane %v79_v34, 4 }
   0xf   :  { %229 = vperm.xlu0 %1512, %v211_v35   ;;  %v64_v47 = vrot.slane %v63_v42, 2 }
  0x10   :  { %v91_v41 = vrot.slane %v90_v36, 2  ;;  %v74_v44 = vadd.f32 %v73_v39, %v72_v33  ;;  %v81_v45 = vadd.f32 %v80_v40, %v79_v34 }
  0x11   :  { %v65_v51 = vadd.f32 %v64_v47, %v63_v42 }
  0x12   :  { %v92_v46 = vadd.f32 %v91_v41, %v90_v36  ;;  %v75_v48 = vrot.slane %v74_v44, 1  ;;  %v82_v49 = vrot.slane %v81_v45, 2 }
  0x13   :  { %956 = vperm.xlu0 %1512, %v952_v43   ;;  %v66_v56 = vrot.slane %v65_v51, 1 }
  0x14   :  { %v93_v50 = vrot.slane %v92_v46, 1  ;;  %v76_v53 = vadd.f32 %v75_v48, %v74_v44  ;;  %v83_v54 = vadd.f32 %v82_v49, %v81_v45 }
  0x15   :  { %v67_v60 = vadd.f32 %v66_v56, %v65_v51 }
  0x16   :  { %v94_v55 = vadd.f32 %v93_v50, %v92_v46  ;;  %v97_v57 = vmul.f32 0.03125, %v76_v53  ;;  %v84_v61 = vrot.slane %v83_v54, 1 }
  0x17   :  { %1106 = vperm.xlu0 %1512, %v1103_v52   ;;  %v96_v21 = vmul.f32 0.03125, %v67_v60 }
  0x18   :  { %v99_v59 = vmul.f32 0.03125, %v94_v55  ;;  %v1836_v62 = vsub.f32 %v1723_v1, %v97_v57  ;;  %v1839_v63 = vsub.f32 %v1728_v2, %v97_v57  ;;  %v1842_v0 = vsub.f32 %v1733_v3, %v97_v57 }
  0x19   :  { %v1845_v4 = vsub.f32 %v1752_v8, %v97_v57  ;;  %v85_v23 = vadd.f32 %v84_v61, %v83_v54  ;;  %v1875_v28 = vsub.f32 %v1764_v11, %v96_v21  ;;  %v1878_v29 = vsub.f32 %v1775_v14, %v96_v21 }
  0x1a   :  { %v1848_v10 = vsub.f32 %v1740_v5, %v99_v59  ;;  %v1851_v12 = vsub.f32 %v1745_v6, %v99_v59  ;;  %v1854_v16 = vsub.f32 %v1757_v9, %v99_v59  ;;  %v1856_v1 = vsub.f32 %v1414_v13, %v99_v59 }
  0x1b   :  { %v117_v2 = vmul.f32 %v1836_v62, %v1836_v62  ;;  %v121_v3 = vmul.f32 %v1839_v63, %v1839_v63  ;;  %v125_v8 = vmul.f32 %v1842_v0, %v1842_v0  ;;  %1252 = vperm.xlu0 %1512, %v1249_v58   ;;  %v129_v13 = vmul.f32 %v1845_v4, %v1845_v4 }
  0x1c   :  { %v119_v5 = vmul.f32 %v1848_v10, %v1848_v10  ;;  %v123_v6 = vmul.f32 %v1851_v12, %v1851_v12  ;;  %v127_v9 = vmul.f32 %v1854_v16, %v1854_v16  ;;  %v131_v24 = vmul.f32 %v1856_v1, %v1856_v1 }
  0x1d   :  { %v141_v17 = vadd.f32 %v121_v3, %v117_v2  ;;  %v1881_v30 = vsub.f32 %v1780_v15, %v96_v21  ;;  %v1884_v32 = vsub.f32 %v1804_v22, %v96_v21  ;;  %v98_v33 = vmul.f32 0.03125, %v85_v23 }
  0x1e   :  { %v159_v25 = vadd.f32 %v123_v6, %v119_v5  ;;  %v116_v35 = vmul.f32 %v1875_v28, %v1875_v28  ;;  %v120_v36 = vmul.f32 %v1878_v29, %v1878_v29 }
  0x1f   :  { %v142_v27 = vadd.f32 %v141_v17, %v125_v8  ;;  %v124_v11 = vmul.f32 %v1881_v30, %v1881_v30  ;;  %v128_v15 = vmul.f32 %v1884_v32, %v1884_v32  ;;  %v1895_v37 = vsub.f32 %v1788_v18, %v98_v33 }
  0x20   :  { %v160_v31 = vadd.f32 %v159_v25, %v127_v9  ;;  %v1898_v22 = vsub.f32 %v1793_v19, %v98_v33  ;;  %v132_v39 = vadd.f32 %v120_v36, %v116_v35  ;;  %v1901_v40 = vsub.f32 %v1798_v20, %v98_v33 }
  0x21   :  { %v143_v34 = vadd.f32 %v142_v27, %v129_v13  ;;  %v1904_v41 = vsub.f32 %v1812_v26, %v98_v33  ;;  %v118_v43 = vmul.f32 %v1895_v37, %v1895_v37 }
  0x22   :  { %v161_v14 = vadd.f32 %v160_v31, %v131_v24  ;;  %v122_v44 = vmul.f32 %v1898_v22, %v1898_v22  ;;  %v133_v45 = vadd.f32 %v132_v39, %v124_v11  ;;  %v126_v19 = vmul.f32 %v1901_v40, %v1901_v40 }
  0x23   :  { %v144_v38 = vrot.slane %v143_v34, 4  ;;  %v130_v20 = vmul.f32 %v1904_v41, %v1904_v41 }
  0x24   :  { %v162_v42 = vrot.slane %v161_v14, 4  ;;  %v150_v47 = vadd.f32 %v122_v44, %v118_v43  ;;  %v134_v26 = vadd.f32 %v133_v45, %v128_v15 }
  0x25   :  { %v145_v18 = vadd.f32 %v144_v38, %v143_v34 }
  0x26   :  { %v163_v46 = vadd.f32 %v162_v42, %v161_v14  ;;  %v151_v50 = vadd.f32 %v150_v47, %v126_v19 }
  0x27   :  { %v146_v48 = vrot.slane %v145_v18, 2 }
  0x28   :  { %v164_v49 = vrot.slane %v163_v46, 2 }
  0x29   :  { %18 = vsyncpa [#allocation4], 0  ;;  %v147_v51 = vadd.f32 %v146_v48, %v145_v18  ;;  %v135_v52 = vrot.slane %v134_v26, 4  ;;  %v152_v54 = vadd.f32 %v151_v50, %v130_v20  ;;  %vm242_vm0 = vcmask 261120   ;;  %v1521_v50 = vld [vmem:[%s2182_s3 + $0xf0] sm:$0xff]  }
  0x2a   :  { %v165_v53 = vadd.f32 %v164_v49, %v163_v46  ;;  %v1520_v49 = vld [vmem:[%s2182_s3 + $0x70] sm:$0xff]   ;;  %vm785_vm1 = vcmask 64512   ;;  %vm1109_vm2 = vcmask 130048  }
  0x2b   :  { %v148_v55 = vrot.slane %v147_v51, 1  ;;  %v136_v56 = vadd.f32 %v135_v52, %v134_v26  ;;  %v153_v58 = vrot.slane %v152_v54, 4  ;;  %v1523_v52 = vld [vmem:[%s2182_s3 + $0xb0] sm:$0xff]  }
  0x2c   :  { %v166_v57 = vrot.slane %v165_v53, 1 }
  0x2d   :  { %v149_v59 = vadd.f32 %v148_v55, %v147_v51  ;;  %v137_v60 = vrot.slane %v136_v56, 2  ;;  %v154_v2 = vadd.f32 %v153_v58, %v152_v54  ;;  %v1522_v51 = vld [vmem:[%s2182_s3 + $0x30] sm:$0xff]   ;;  %v1525_v54 = vld [vmem:[%s2182_s3 + $0xe8] sm:$0xff]   ;;  %v1529_v58 = vld [vmem:[%s2182_s3 + $0xe0] sm:$0xff]  }
  0x2e   :  { %v167_v61 = vadd.f32 %v166_v57, %v165_v53  ;;  %v1524_v53 = vld [vmem:[%s2182_s3 + $0x68] sm:$0xff]   ;;  %v1528_v57 = vld [vmem:[%s2182_s3 + $0x60] sm:$0xff]  }
  0x2f   :  { %v169_v3 = vmul.f32 0.03125, %v149_v59  ;;  %v138_v8 = vadd.f32 %v137_v60, %v136_v56  ;;  %v155_v6 = vrot.slane %v154_v2, 2  ;;  %v1526_v55 = vld [vmem:[%s2182_s3 + $0x28] sm:$0xff]   ;;  %v1530_v59 = vld [vmem:[%s2182_s3 + $0x20] sm:$0xff]  }
  0x30   :  { %v171_v5 = vmul.f32 0.03125, %v167_v61  ;;  %v1527_v56 = vld [vmem:[%s2182_s3 + $0xa8] sm:$0xff]   ;;  %v1531_v60 = vld [vmem:[%s2182_s3 + $0xa0] sm:$0xff]   ;;  %v1532_v61 = vld [vmem:[%s2182_s3 + $0x58] sm:$0xff]  }
  0x31   :  { %v173_v9 = vadd.f32 1e-05, %v169_v3  ;;  %v139_v13 = vrot.slane %v138_v8, 1  ;;  %v156_v21 = vadd.f32 %v155_v6, %v154_v2  ;;  %v1533_v2 = vld [vmem:[%s2182_s3 + $0xd8] sm:$0xff]   ;;  %v1537_v6 = vld [vmem:[%s2182_s3 + $0xd0] sm:$0xff]  }
  0x32   :  { %v175_v17 = vadd.f32 1e-05, %v171_v5  ;;  %v1534_v3 = vld [vmem:[%s2182_s3 + $0x18] sm:$0xff]   ;;  %v1536_v5 = vld [vmem:[%s2182_s3 + $0x50] sm:$0xff]  }
  0x33   :  { %1549 = vrsqrt.f32 %v173_v9  ;;  %v140_v23 = vadd.f32 %v139_v13, %v138_v8  ;;  %v157_v24 = vrot.slane %v156_v21, 1  ;;  %v1535_v8 = vld [vmem:[%s2182_s3 + $0x98] sm:$0xff]   ;;  %v1538_v9 = vld [vmem:[%s2182_s3 + $0x10] sm:$0xff]  }
  0x34   :  { %1551 = vrsqrt.f32 %v175_v17  ;;  %v1539_v13 = vld [vmem:[%s2182_s3 + $0x90] sm:$0xff]   ;;  %v1540_v17 = vld [vmem:[%s2182_s3 + $0x48] sm:$0xff]  }
  0x35   :  { %v168_v25 = vmul.f32 0.03125, %v140_v23  ;;  %v158_v27 = vadd.f32 %v157_v24, %v156_v21  ;;  %v1541_v21 = vld [vmem:[%s2182_s3 + $0xc8] sm:$0xff]  }
  0x36   :  { %v1542_v23 = vld [vmem:[%s2182_s3 + $0x8] sm:$0xff]  }
  0x37   :  { %v172_v31 = vadd.f32 1e-05, %v168_v25  ;;  %v170_v33 = vmul.f32 0.03125, %v158_v27  ;;  %v1543_v24 = vld [vmem:[%s2182_s3 + $0x88] sm:$0xff]   ;;  %v1544_v25 = vld [vmem:[%s2182_s3 + $0x40] sm:$0xff]  }
  0x38   :  { %v1545_v27 = vld [vmem:[%s2182_s3 + $0xc0] sm:$0xff]  }
  0x39   :  { %1553 = vrsqrt.f32 %v172_v31  ;;  %v174_v34 = vadd.f32 1e-05, %v170_v33  ;;  %v1546_v31 = vld [vmem:[%s2182_s3] sm:$0xff]  }
  0x3a   :  { %v1547_v33 = vld [vmem:[%s2182_s3 + $0x80] sm:$0xff]  }
  0x3b   :  { %1555 = vrsqrt.f32 %v174_v34 }
  0x40   :  { %v1550_v35 = vpop.eup %1549 }
  0x41   :  { %v1552_v36 = vpop.eup %1551  ;;  %v189_v11 = vmul.f32 %v1550_v35, %v1842_v0  ;;  %v193_v14 = vmul.f32 %v1550_v35, %v1845_v4  ;;  %v181_v43 = vmul.f32 %v1550_v35, %v1836_v62  ;;  %v185_v44 = vmul.f32 %v1550_v35, %v1839_v63 }
  0x42   :  { %v191_v15 = vmul.f32 %v1552_v36, %v1854_v16  ;;  %v195_v38 = vmul.f32 %v1552_v36, %v1856_v1  ;;  %v183_v45 = vmul.f32 %v1552_v36, %v1848_v10  ;;  %v187_v19 = vmul.f32 %v1552_v36, %v1851_v12 }
  0x43   :  { %v205_v39 = vpack.c.bf16 %v193_v14, %v189_v11  ;;  %v201_v46 = vpack.c.bf16 %v185_v44, %v181_v43 }
  0x44   :  { %v207_v42 = vpack.c.bf16 %v195_v38, %v191_v15  ;;  %v203_v12 = vpack.c.bf16 %v187_v19, %v183_v45 }
  0x45   :  { %261 = vmatprep.subr.bf16.mxu0 %v205_v39 }
  0x46   :  { %v1554_v18 = vpop.eup %1553  ;;  %314 = vmatprep.subr.bf16.mxu1 %v207_v42 }
  0x47   :  { %v188_v0 = vmul.f32 %v1554_v18, %v1881_v30  ;;  %v192_v4 = vmul.f32 %v1554_v18, %v1884_v32  ;;  %v180_v16 = vmul.f32 %v1554_v18, %v1875_v28  ;;  %v184_v1 = vmul.f32 %v1554_v18, %v1878_v29  ;;  %v1514_v29 = vld [vmem:[%s2180_s1] sm:$0xff]   ;;  %v1515_v32 = vld [vmem:[%s2180_s1 + $0x8] sm:$0xff]  }
  0x48   :  { %v1556_v20 = vpop.eup %1555 }
  0x49   :  { %v204_v62 = vpack.c.bf16 %v192_v4, %v188_v0  ;;  %v190_v63 = vmul.f32 %v1556_v20, %v1901_v40  ;;  %v194_v47 = vmul.f32 %v1556_v20, %v1904_v41  ;;  %v182_v48 = vmul.f32 %v1556_v20, %v1895_v37  ;;  %v1516_v37 = vld [vmem:[%s2182_s3 + $0x78] sm:$0xff]  }
  0x4a   :  { %v186_v10 = vmul.f32 %v1556_v20, %v1898_v22  ;;  %v200_v30 = vpack.c.bf16 %v184_v1, %v180_v16  ;;  %v1517_v22 = vld [vmem:[%s2182_s3 + $0xf8] sm:$0xff]  }
  0x4b   :  { %262 = vmatpush1.bf16.msra.mxu0 %v204_v62  ;;  %v206_v26 = vpack.c.bf16 %v194_v47, %v190_v63  ;;  %v1518_v40 = vld [vmem:[%s2182_s3 + $0x38] sm:$0xff]  }
  0x4c   :  { %263 = vmatprep.subr.bf16.mxu0 %v201_v46  ;;  %v202_v28 = vpack.c.bf16 %v186_v10, %v182_v48  ;;  %v1519_v41 = vld [vmem:[%s2182_s3 + $0xb8] sm:$0xff]  }
  0x4d   :  { %315 = vmatpush1.bf16.msra.mxu1 %v206_v26 }
  0x4e   :  { %316 = vmatprep.subr.bf16.mxu1 %v203_v12 }
  0x4f   :  { %264 = vmatpush1.bf16.msra.mxu0 %v200_v30 }
  0x50   :  { %1462 = vmatprep.subr.bf16.mxu0 %v1516_v37 }
  0x51   :  { %317 = vmatpush1.bf16.msra.mxu1 %v202_v28 }
  0x52   :  { %1417 = vmatmul.mubr.msk.bf16.vlgmr.msra.gmra.mxu0 %vm242_vm0, %v1514_v29  ;;  %1484 = vmatprep.subr.bf16.mxu1 %v1517_v22 }
  0x53   :  { %291 = vmatprep.mubr.bf16.mxu0 %v1651_v7  ;;  %1463 = vmatpush3.bf16.msra.mxu0 %v1518_v40 }
  0x54   :  { %1419 = vmatmul.mubr.msk.bf16.vlgmr.msra.gmra.mxu1 %vm242_vm0, %v1514_v29  ;;  %1464 = vmatprep.subr.bf16.mxu0 %v1520_v49 }
  0x55   :  { %344 = vmatprep.mubr.bf16.mxu1 %v1651_v7  ;;  %1485 = vmatpush3.bf16.msra.mxu1 %v1519_v41 }
  0x56   :  { %1486 = vmatprep.subr.bf16.mxu1 %v1521_v50 }
  0x57   :  { %1465 = vmatpush3.bf16.msra.mxu0 %v1522_v51 }
  0x58   :  { %1466 = vmatprep.subr.bf16.mxu0 %v1524_v53 }
  0x59   :  { %1487 = vmatpush3.bf16.msra.mxu1 %v1523_v52 }
  0x5a   :  { %1418 = vmatmul.mubr.msk.bf16.gmra.mxu0 %vm242_vm0, %v1515_v32  ;;  %1488 = vmatprep.subr.bf16.mxu1 %v1525_v54 }
  0x5b   :  { %1467 = vmatpush3.bf16.msra.mxu0 %v1526_v55 }
  0x5c   :  { %1420 = vmatmul.mubr.msk.bf16.gmra.mxu1 %vm242_vm0, %v1515_v32  ;;  %1468 = vmatprep.subr.bf16.mxu0 %v1528_v57 }
  0x5d   :  { %1489 = vmatpush3.bf16.msra.mxu1 %v1527_v56 }
  0x5e   :  { %1490 = vmatprep.subr.bf16.mxu1 %v1529_v58 }
  0x5f   :  { %1469 = vmatpush3.bf16.msra.mxu0 %v1530_v59 }
  0x60   :  { %1470 = vmatprep.subr.bf16.mxu0 %v1532_v61 }
  0x61   :  { %1491 = vmatpush3.bf16.msra.mxu1 %v1531_v60 }
  0x62   :  { %1492 = vmatprep.subr.bf16.mxu1 %v1533_v2 }
  0x63   :  { %1471 = vmatpush3.bf16.msra.mxu0 %v1534_v3 }
  0x64   :  { %1472 = vmatprep.subr.bf16.mxu0 %v1536_v5 }
  0x65   :  { %1493 = vmatpush3.bf16.msra.mxu1 %v1535_v8 }
  0x66   :  { %1494 = vmatprep.subr.bf16.mxu1 %v1537_v6 }
  0x67   :  { %1473 = vmatpush3.bf16.msra.mxu0 %v1538_v9 }
  0x68   :  { %1474 = vmatprep.subr.bf16.mxu0 %v1540_v17 }
  0x69   :  { %1495 = vmatpush3.bf16.msra.mxu1 %v1539_v13 }
  0x6a   :  { %1496 = vmatprep.subr.bf16.mxu1 %v1541_v21 }
  0x6b   :  { %1475 = vmatpush3.bf16.msra.mxu0 %v1542_v23 }
  0x6c   :  { %1476 = vmatprep.subr.bf16.mxu0 %v1544_v25 }
  0x6d   :  { %1497 = vmatpush3.bf16.msra.mxu1 %v1543_v24 }
  0x6e   :  { %1498 = vmatprep.subr.bf16.mxu1 %v1545_v27 }
  0x6f   :  { %1477 = vmatpush3.bf16.msra.mxu0 %v1546_v31 }
  0x71   :  { %1499 = vmatpush3.bf16.msra.mxu1 %v1547_v33 }
  0x84   :  { %v215_v34 = vpop.permute.xlu1 %214 }
  0x86   :  { %v225_v19 = vpop.permute.xlu0 %224 }
  0x88   :  { %v220_v14 = vpop.permute.xlu1 %219 }
  0x8a   :  { %v230_v22 = vpop.permute.xlu0 %229 }
 0x112   :  { %v283_v35 = vpop.f32.mrf.mxu0 }
 0x113   :  { %v2038_v36 = vadd.f32 %v283_v35, %v215_v34 }
 0x114   :  { %v285_v11 = vpop.f32.mrf.mxu0  ;;  %v336_v38 = vpop.f32.mrf.mxu1 }
 0x115   :  { %v371_v15 = vmul.f32 0.70710677, %v2038_v36  ;;  %v2041_v39 = vadd.f32 %v285_v11, %v215_v34  ;;  %v2043_v42 = vadd.f32 %v336_v38, %v215_v34  ;;  %v355_v24 = vmul.f32 0.5, %v2038_v36 }
 0x116   :  { %v287_v43 = vpop.f32.mrf.mxu0  ;;  %v338_v18 = vpop.f32.mrf.mxu1 }
 0x117   :  { %1557 = verf.f32 %v371_v15  ;;  %v372_v44 = vmul.f32 0.70710677, %v2041_v39  ;;  %v288_v45 = vadd.f32 %v287_v43, %v220_v14  ;;  %v373_v0 = vmul.f32 0.70710677, %v2043_v42 }
 0x118   :  { %v2047_v4 = vadd.f32 %v338_v18, %v215_v34  ;;  %v289_v16 = vpop.f32.mrf.mxu0  ;;  %v340_v46 = vpop.f32.mrf.mxu1  ;;  %v356_v35 = vmul.f32 0.5, %v2041_v39  ;;  %v357_v18 = vmul.f32 0.5, %v2043_v42 }
 0x119   :  { %1559 = verf.f32 %v372_v44  ;;  %v375_v1 = vmul.f32 0.70710677, %v288_v45  ;;  %v2049_v20 = vadd.f32 %v289_v16, %v220_v14  ;;  %v2052_v63 = vadd.f32 %v340_v46, %v220_v14 }
 0x11a   :  { %1561 = verf.f32 %v373_v0  ;;  %v374_v62 = vmul.f32 0.70710677, %v2047_v4  ;;  %v293_v47 = vpop.f32.mrf.mxu0  ;;  %v342_v10 = vpop.f32.mrf.mxu1  ;;  %v359_v27 = vmul.f32 0.5, %v288_v45  ;;  %v358_v39 = vmul.f32 0.5, %v2047_v4 }
 0x11b   :  { %1563 = verf.f32 %v375_v1  ;;  %v376_v48 = vmul.f32 0.70710677, %v2049_v20  ;;  %v2055_v12 = vadd.f32 %v293_v47, %v225_v19  ;;  %v377_v30 = vmul.f32 0.70710677, %v2052_v63 }
 0x11c   :  { %1565 = verf.f32 %v374_v62  ;;  %v2058_v26 = vadd.f32 %v342_v10, %v220_v14  ;;  %v295_v28 = vpop.f32.mrf.mxu0  ;;  %v346_v32 = vpop.f32.mrf.mxu1  ;;  %v360_v38 = vmul.f32 0.5, %v2049_v20  ;;  %v361_v36 = vmul.f32 0.5, %v2052_v63 }
 0x11d   :  { %1567 = verf.f32 %v376_v48  ;;  %v379_v29 = vmul.f32 0.70710677, %v2055_v12  ;;  %v2061_v37 = vadd.f32 %v295_v28, %v225_v19  ;;  %v2064_v41 = vadd.f32 %v346_v32, %v225_v19 }
 0x11e   :  { %1569 = verf.f32 %v377_v30  ;;  %v378_v40 = vmul.f32 0.70710677, %v2058_v26  ;;  %v297_v49 = vpop.f32.mrf.mxu0  ;;  %v348_v51 = vpop.f32.mrf.mxu1  ;;  %v362_v42 = vmul.f32 0.5, %v2058_v26 }
 0x11f   :  { %1571 = verf.f32 %v379_v29  ;;  %v380_v50 = vmul.f32 0.70710677, %v2061_v37  ;;  %v2067_v52 = vadd.f32 %v297_v49, %v230_v22  ;;  %v381_v53 = vmul.f32 0.70710677, %v2064_v41 }
 0x120   :  { %1573 = verf.f32 %v378_v40  ;;  %v2070_v54 = vadd.f32 %v348_v51, %v225_v19  ;;  %v299_v55 = vpop.f32.mrf.mxu0  ;;  %v350_v57 = vpop.f32.mrf.mxu1 }
 0x121   :  { %1575 = verf.f32 %v380_v50  ;;  %v383_v56 = vmul.f32 0.70710677, %v2067_v52  ;;  %v300_v58 = vadd.f32 %v299_v55, %v230_v22  ;;  %v2074_v60 = vadd.f32 %v350_v57, %v230_v22 }
 0x122   :  { %1577 = verf.f32 %v381_v53  ;;  %v382_v59 = vmul.f32 0.70710677, %v2070_v54  ;;  %v352_v2 = vpop.f32.mrf.mxu1  ;;  %v367_v26 = vmul.f32 0.5, %v2067_v52  ;;  %v364_v55 = vmul.f32 0.5, %v2061_v37 }
 0x123   :  { %1579 = verf.f32 %v383_v56  ;;  %v384_v61 = vmul.f32 0.70710677, %v300_v58  ;;  %v385_v8 = vmul.f32 0.70710677, %v2074_v60  ;;  %v2077_v5 = vadd.f32 %v352_v2, %v230_v22 }
 0x124   :  { %v1558_v3 = vpop.eup %1557  ;;  %1581 = verf.f32 %v382_v59  ;;  %v368_v56 = vmul.f32 0.5, %v300_v58  ;;  %v363_v59 = vmul.f32 0.5, %v2055_v12  ;;  %v365_v37 = vmul.f32 0.5, %v2064_v41  ;;  %v784_v41 = vld [vmem:[%s2183_s4 + $0x18] sm:$0xff] }
 0x125   :  { %1583 = verf.f32 %v384_v61  ;;  %v386_v9 = vmul.f32 0.70710677, %v2077_v5  ;;  %v403_v17 = vadd.f32 1.0, %v1558_v3  ;;  %899 = vmatprep.subr.mxu1 %v784_v41 }
 0x126   :  { %v1560_v6 = vpop.eup %1559  ;;  %1585 = verf.f32 %v385_v8 }
 0x127   :  { %v1562_v13 = vpop.eup %1561  ;;  %1587 = verf.f32 %v386_v9  ;;  %v404_v25 = vadd.f32 1.0, %v1560_v6  ;;  %v2082_v14 = vmul.f32 %v403_v17, %v355_v24 }
 0x128   :  { %v1564_v21 = vpop.eup %1563  ;;  %v405_v34 = vadd.f32 1.0, %v1562_v13  ;;  %v369_v13 = vmul.f32 0.5, %v2074_v60  ;;  %v781_v60 = vld [vmem:[%s2183_s4] sm:$0xff] }
 0x129   :  { %v1566_v23 = vpop.eup %1565  ;;  %v407_v31 = vadd.f32 1.0, %v1564_v21  ;;  %v2089_v16 = vmul.f32 %v404_v25, %v356_v35  ;;  %v366_v21 = vmul.f32 0.5, %v2070_v54  ;;  %v782_v54 = vld [vmem:[%s2183_s4 + $0x8] sm:$0xff] }
 0x12a   :  { %v1568_v33 = vpop.eup %1567  ;;  %v406_v19 = vadd.f32 1.0, %v1566_v23  ;;  %v2096_v20 = vmul.f32 %v405_v34, %v357_v18  ;;  %v370_v23 = vmul.f32 0.5, %v2077_v5  ;;  %822 = vmatprep.subr.mxu0 %v782_v54  ;;  %v783_v5 = vld [vmem:[%s2183_s4 + $0x10] sm:$0xff] }
 0x12b   :  { %v1570_v11 = vpop.eup %1569  ;;  %v2084_v15 = vmul.f32 %v407_v31, %v359_v27  ;;  %v408_v43 = vadd.f32 1.0, %v1568_v33 }
 0x12c   :  { %v1572_v44 = vpop.eup %1571  ;;  %v409_v45 = vadd.f32 1.0, %v1570_v11  ;;  %v2103_v28 = vmul.f32 %v406_v19, %v358_v39  ;;  %v1652_v11 = vmov 0.0  }
 0x12d   :  { %v1574_v0 = vpop.eup %1573  ;;  %v435_v1 = vpack.c.bf16 %v2084_v15, %v2082_v14  ;;  %v2094_v46 = vmul.f32 %v408_v43, %v360_v38  ;;  %v411_v50 = vadd.f32 1.0, %v1572_v44  ;;  %v953_v38 = vld [vmem:[%s2185_s6 + $0x8] sm:$0xff]  ;;  %v1215_v43 = vld [vmem:[%s2188_s9] sm:$0xff] }
 0x12e   :  { %v1576_v62 = vpop.eup %1575  ;;  %v2098_v47 = vmul.f32 %v409_v45, %v361_v36  ;;  %v410_v48 = vadd.f32 1.0, %v1574_v0  ;;  %961 = vperm.xlu1 %1513, %v953_v38  }
 0x12f   :  { %v1578_v63 = vpop.eup %1577  ;;  %v436_v10 = vpack.c.bf16 %v2094_v46, %v2089_v16  ;;  %v412_v22 = vadd.f32 1.0, %v1576_v62  ;;  %v427_v52 = vmul.f32 %v411_v50, %v363_v59  ;;  %v957_v16 = vpop.permute.xlu0 %956 }
 0x130   :  { %v1580_v30 = vpop.eup %1579  ;;  %v437_v4 = vpack.c.bf16 %v2098_v47, %v2096_v20  ;;  %v2107_v29 = vmul.f32 %v410_v48, %v362_v42  ;;  %v413_v6 = vadd.f32 1.0, %v1578_v63 }
 0x131   :  { %v1582_v32 = vpop.eup %1581  ;;  %v415_v40 = vadd.f32 1.0, %v1580_v30  ;;  %v428_v9 = vmul.f32 %v412_v22, %v364_v55 }
 0x132   :  { %v1584_v49 = vpop.eup %1583  ;;  %v438_v51 = vpack.c.bf16 %v2107_v29, %v2103_v28  ;;  %v414_v61 = vadd.f32 1.0, %v1582_v32  ;;  %v429_v33 = vmul.f32 %v413_v6, %v365_v37  ;;  %1218 = vperm.xlu1 %1513, %v1215_v43  }
 0x133   :  { %v1586_v53 = vpop.eup %1585  ;;  %v416_v57 = vadd.f32 1.0, %v1584_v49  ;;  %v431_v2 = vmul.f32 %v415_v40, %v367_v26 }
 0x134   :  { %v417_v3 = vadd.f32 1.0, %v1586_v53  ;;  %v1588_v8 = vpop.eup %1587  ;;  %v430_v12 = vmul.f32 %v414_v61, %v366_v21 }
 0x135   :  { %v432_v17 = vmul.f32 %v416_v57, %v368_v56  ;;  %v418_v24 = vadd.f32 1.0, %v1588_v8  ;;  %v439_v27 = vpack.c.bf16 %v431_v2, %v427_v52  ;;  %v1548_v8 = vld [vmem:[%s2184_s5] sm:$0xff]  }
 0x136   :  { %v433_v58 = vmul.f32 %v417_v3, %v369_v13 }
 0x137   :  { %v440_v25 = vpack.c.bf16 %v432_v17, %v428_v9  ;;  %v434_v31 = vmul.f32 %v418_v24, %v370_v23 }
 0x138   :  { %v441_v35 = vpack.c.bf16 %v433_v58, %v429_v33 }
 0x139   :  { %731 = vmatprep.mubr.bf16.mxu0 %v440_v25  ;;  %v442_v34 = vpack.c.bf16 %v434_v31, %v430_v12 }
 0x13a   :  { %732 = vmatmul.mubr.bf16.vlgmr.msra.gmra.mxu0 %v439_v27 }
 0x13b   :  { %772 = vmatprep.mubr.bf16.mxu1 %v442_v34  ;;  %823 = vmatpush1.msra.mxu0 %v781_v60 }
 0x13c   :  { %773 = vmatmul.mubr.bf16.vlgmr.msra.gmra.mxu1 %v441_v35  ;;  %856 = vmatprep.mubr.f32.mxu0 %v1652_v11 }
 0x13d   :  { %900 = vmatpush1.msra.mxu1 %v783_v5  ;;  %933 = vmatprep.mubr.f32.mxu1 %v1652_v11 }
 0x1a9   :  { %v962_v15 = vpop.permute.xlu1 %961 }
 0x1fa   :  { %v1478_v44 = vpop.f32.mrf.mxu0 }
 0x1fc   :  { %v1479_v18 = vpop.f32.mrf.mxu0  ;;  %v1500_v19 = vpop.f32.mrf.mxu1 }
 0x1fd   :  { %v1480_v36 = vadd.f32 %v1479_v18, %v1478_v44 }
 0x1fe   :  { %v1481_v45 = vpop.f32.mrf.mxu0  ;;  %v1501_v0 = vpop.f32.mrf.mxu1 }
 0x1ff   :  { %v1502_v39 = vadd.f32 %v1501_v0, %v1500_v19 }
 0x200   :  { %v1482_v62 = vpop.f32.mrf.mxu0  ;;  %v1503_v42 = vpop.f32.mrf.mxu1 }
 0x201   :  { %v775_v48 = vadd.f32 %v1502_v39, %v1480_v36  ;;  %v1483_v63 = vadd.f32 %v1482_v62, %v1481_v45 }
 0x202   :  { %v1504_v30 = vpop.f32.mrf.mxu1 }
 0x203   :  { %v1505_v32 = vadd.f32 %v1504_v30, %v1503_v42  ;;  %1453 = vmatmul.mubr.msk.f32.vlgmr.msra.gmra.mxu0 %vm785_vm1, %v775_v48  ;;  %1455 = vmatmul.mubr.msk.f32.vlgmr.msra.gmra.mxu1 %vm785_vm1, %v775_v48 }
 0x204   :  { %862 = vmatprep.mubr.f32.mxu0 %v1652_v11  ;;  %939 = vmatprep.mubr.f32.mxu1 %v1652_v11 }
 0x205   :  { %v778_v22 = vadd.f32 %v1505_v32, %v1483_v63 }
 0x207   :  { %1454 = vmatmul.mubr.msk.f32.gmra.mxu0 %vm785_vm1, %v778_v22  ;;  %1456 = vmatmul.mubr.msk.f32.gmra.mxu1 %vm785_vm1, %v778_v22 }
 0x208   :  { %1004 = vmatprep.mubr.bf16.mxu0 %v1651_v7  ;;  %1047 = vmatprep.mubr.bf16.mxu1 %v1651_v7 }
 0x2c3   :  { %v858_v40 = vpop.f32.mrf.mxu0  ;;  %v935_v49 = vpop.f32.mrf.mxu1 }
 0x2c5   :  { %v860_v50 = vpop.f32.mrf.mxu0  ;;  %v937_v26 = vpop.f32.mrf.mxu1 }
 0x2c7   :  { %v864_v53 = vpop.f32.mrf.mxu0  ;;  %v941_v55 = vpop.f32.mrf.mxu1 }
 0x2c8   :  { %v946_v2 = vpack.c.bf16 %v864_v53, %v858_v40  ;;  %v948_v3 = vpack.c.bf16 %v941_v55, %v935_v49 }
 0x2c9   :  { %v866_v56 = vpop.f32.mrf.mxu0  ;;  %v943_v57 = vpop.f32.mrf.mxu1 }
 0x2ca   :  { %v947_v59 = vpack.c.bf16 %v866_v56, %v860_v50  ;;  %v949_v61 = vpack.c.bf16 %v943_v57, %v937_v26 }
 0x2cc   :  { %984 = vmatprep.subr.bf16.mxu0 %v947_v59  ;;  %1027 = vmatprep.subr.bf16.mxu1 %v949_v61 }
 0x2cd   :  { %985 = vmatpush1.bf16.msra.mxu0 %v946_v2  ;;  %1028 = vmatpush1.bf16.msra.mxu1 %v948_v3  ;;  %v1098_v3 = vld [vmem:[%s2186_s7] sm:$0xf]  ;;  %s1654_s7 = smov [#allocation3]  }
 0x2ce   :  { %986 = vmatprep.subr.bf16.mxu0 %v436_v10  ;;  %1029 = vmatprep.subr.bf16.mxu1 %v438_v51  ;;  %s1395_s26 = sshll.u32 %s1654_s7, 4  ;;  %s1396_s26 = int_to_ptr.vmem [resolvable:$true] %s1395_s26 }
 0x2cf   :  { %s1629_s27 = scalar_lea.vmem %s1396_s26, 128  ;;  %p1634_p1 = scmp.lt.s32.totalorder %s1396_s26, %s1396_s26 }
 0x2d0   :  { %p1630_p0 = scmp.ne.s32.totalorder %s1396_s26, %s1629_s27  ;;  %p1635_p2 = scmp.lt.s32.totalorder %s1629_s27, %s1629_s27 }
 0x2d1   :  { %987 = vmatpush1.bf16.msra.mxu0 %v435_v1  ;;  %1030 = vmatpush1.bf16.msra.mxu1 %v437_v4 }
 0x2d2   :  { %p1636_p3 = por %p1635_p2, %p1634_p1 }
 0x2d4   :  { %1458 = vmatmul.mubr.msk.bf16.vlgmr.msra.gmra.mxu0 %vm242_vm0, %v1548_v8  ;;  %1459 = vmatmul.mubr.msk.bf16.vlgmr.msra.gmra.mxu1 %vm242_vm0, %v1548_v8  ;;  %v1107_v8 = vpop.permute.xlu0 %1106  ;;  %p1637_p4 = pnand %p1636_p3, %p1630_p0 }
 0x2d5   :  { %1145 = vmatprep.mubr.bf16.mxu0 %v1651_v7  ;;  %1186 = vmatprep.mubr.bf16.mxu1 %v1651_v7 }
 0x394   :  { %v1006_v46 = vpop.f32.mrf.mxu0  ;;  %v1049_v10 = vpop.f32.mrf.mxu1 }
 0x395   :  { %v1007_v28 = vadd.f32 %v1006_v46, %v957_v16  ;;  %v1050_v29 = vadd.f32 %v1049_v10, %v957_v16 }
 0x396   :  { %v1008_v51 = vpop.f32.mrf.mxu0  ;;  %v1051_v14 = vpop.f32.mrf.mxu1 }
 0x397   :  { %v1066_v1 = vmul.f32 0.70710677, %v1007_v28  ;;  %v1068_v6 = vmul.f32 0.70710677, %v1050_v29  ;;  %v1009_v20 = vadd.f32 %v1008_v51, %v957_v16  ;;  %v1052_v47 = vadd.f32 %v1051_v14, %v957_v16 }
 0x398   :  { %v1010_v4 = vpop.f32.mrf.mxu0  ;;  %v1053_v9 = vpop.f32.mrf.mxu1  ;;  %v1058_v60 = vmul.f32 0.5, %v1007_v28  ;;  %v1060_v22 = vmul.f32 0.5, %v1050_v29 }
 0x399   :  { %v1011_v13 = vadd.f32 %v1010_v4, %v962_v15  ;;  %v1054_v17 = vadd.f32 %v1053_v9, %v962_v15  ;;  %1589 = verf.f32 %v1066_v1  ;;  %v1067_v52 = vmul.f32 0.70710677, %v1009_v20 }
 0x39a   :  { %v1012_v21 = vpop.f32.mrf.mxu0  ;;  %v1055_v7 = vpop.f32.mrf.mxu1  ;;  %1591 = verf.f32 %v1068_v6  ;;  %v1069_v23 = vmul.f32 0.70710677, %v1052_v47  ;;  %v1059_v5 = vmul.f32 0.5, %v1009_v20  ;;  %v1061_v48 = vmul.f32 0.5, %v1052_v47 }
 0x39b   :  { %v1070_v24 = vmul.f32 0.70710677, %v1011_v13  ;;  %1593 = verf.f32 %v1067_v52  ;;  %v1072_v37 = vmul.f32 0.70710677, %v1054_v17  ;;  %v1013_v58 = vadd.f32 %v1012_v21, %v962_v15 }
 0x39c   :  { %v1056_v25 = vadd.f32 %v1055_v7, %v962_v15  ;;  %1595 = verf.f32 %v1069_v23  ;;  %v1062_v19 = vmul.f32 0.5, %v1011_v13  ;;  %v1064_v39 = vmul.f32 0.5, %v1054_v17 }
 0x39d   :  { %1597 = verf.f32 %v1070_v24  ;;  %v1071_v12 = vmul.f32 0.70710677, %v1013_v58  ;;  %v1063_v62 = vmul.f32 0.5, %v1013_v58 }
 0x39e   :  { %1599 = verf.f32 %v1072_v37  ;;  %v1073_v27 = vmul.f32 0.70710677, %v1056_v25  ;;  %v1065_v30 = vmul.f32 0.5, %v1056_v25 }
 0x39f   :  { %1601 = verf.f32 %v1071_v12 }
 0x3a0   :  { %1603 = verf.f32 %v1073_v27 }
 0x3a6   :  { %v1590_v31 = vpop.eup %1589 }
 0x3a7   :  { %v1592_v33 = vpop.eup %1591  ;;  %v1082_v44 = vadd.f32 1.0, %v1590_v31 }
 0x3a8   :  { %v1594_v34 = vpop.eup %1593  ;;  %v1084_v0 = vadd.f32 1.0, %v1592_v33  ;;  %v1219_v33 = vpop.permute.xlu1 %1218 }
 0x3a9   :  { %v1596_v35 = vpop.eup %1595  ;;  %v1083_v11 = vadd.f32 1.0, %v1594_v34  ;;  %v1090_v26 = vmul.f32 %v1082_v44, %v1058_v60 }
 0x3aa   :  { %v1598_v54 = vpop.eup %1597  ;;  %v1085_v18 = vadd.f32 1.0, %v1596_v35  ;;  %v1092_v56 = vmul.f32 %v1084_v0, %v1060_v22 }
 0x3ab   :  { %v1600_v41 = vpop.eup %1599  ;;  %v1086_v38 = vadd.f32 1.0, %v1598_v54  ;;  %v1091_v40 = vmul.f32 %v1083_v11, %v1059_v5 }
 0x3ac   :  { %v1602_v43 = vpop.eup %1601  ;;  %v1088_v36 = vadd.f32 1.0, %v1600_v41  ;;  %v1093_v53 = vmul.f32 %v1085_v18, %v1061_v48  ;;  %v1255_v41 = vlaneseq }
 0x3ad   :  { %v1604_v45 = vpop.eup %1603  ;;  %v1087_v42 = vadd.f32 1.0, %v1602_v43  ;;  %v1094_v63 = vmul.f32 %v1086_v38, %v1062_v19 }
 0x3ae   :  { %v1089_v32 = vadd.f32 1.0, %v1604_v45  ;;  %v1096_v49 = vmul.f32 %v1088_v36, %v1064_v39  ;;  %v2161_v36 = vshrl.u32 %v1255_v41, 7  ;;  %vm1327_vm3 = vcmp.lt.s32.totalorder %v1255_v41, 256 }
 0x3af   :  { %v1095_v50 = vmul.f32 %v1087_v42, %v1063_v62  ;;  %v1099_v59 = vpack.c.bf16 %v1094_v63, %v1090_v26 }
 0x3b0   :  { %v1097_v55 = vmul.f32 %v1089_v32, %v1065_v30  ;;  %v1101_v2 = vpack.c.bf16 %v1096_v49, %v1092_v56  ;;  %v1257_v32 = vsub.s32 0, %v2161_v36  ;;  %v1253_v49 = vpop.permute.xlu0 %1252 }
 0x3b1   :  { %v1100_v57 = vpack.c.bf16 %v1095_v50, %v1091_v40 }
 0x3b2   :  { %v1102_v61 = vpack.c.bf16 %v1097_v55, %v1093_v53 }
 0x3b3   :  { %1127 = vmatprep.subr.bf16.mxu0 %v1100_v57 }
 0x3b4   :  { %1168 = vmatprep.subr.bf16.mxu1 %v1102_v61  ;;  %1128 = vmatpush1.bf16.msra.mxu0 %v1099_v59  ;;  %v1258_v59 = vrot.slane %v1253_v49, %v1257_v32 }
 0x3b5   :  { %1169 = vmatpush1.bf16.msra.mxu1 %v1101_v2 }
 0x3b7   :  { %1460 = vmatmul.mubr.msk.bf16.vlgmr.msra.gmra.mxu0 %vm1109_vm2, %v1098_v3 }
 0x3b8   :  { %1461 = vmatmul.mubr.msk.bf16.vlgmr.msra.gmra.mxu1 %vm1109_vm2, %v1098_v3 }
 0x477   :  { %v1147_v16 = vpop.f32.mrf.mxu0 }
 0x478   :  { %v1148_v46 = vadd.f32 %v1147_v16, %v1107_v8  ;;  %v1188_v10 = vpop.f32.mrf.mxu1 }
 0x479   :  { %v1189_v28 = vadd.f32 %v1188_v10, %v1107_v8  ;;  %v1149_v29 = vpop.f32.mrf.mxu0 }
 0x47a   :  { %v1199_v51 = vmul.f32 0.70710677, %v1148_v46  ;;  %v1150_v14 = vadd.f32 %v1149_v29, %v1107_v8  ;;  %v1190_v15 = vpop.f32.mrf.mxu1  ;;  %v1195_v7 = vmul.f32 0.5, %v1148_v46 }
 0x47b   :  { %v1201_v1 = vmul.f32 0.70710677, %v1189_v28  ;;  %v1191_v6 = vadd.f32 %v1190_v15, %v1107_v8  ;;  %v1151_v20 = vpop.f32.mrf.mxu0  ;;  %v1197_v37 = vmul.f32 0.5, %v1189_v28 }
 0x47c   :  { %1605 = verf.f32 %v1199_v51  ;;  %v1200_v47 = vmul.f32 0.70710677, %v1150_v14  ;;  %v1192_v4 = vpop.f32.mrf.mxu1  ;;  %v1196_v27 = vmul.f32 0.5, %v1150_v14 }
 0x47d   :  { %1607 = verf.f32 %v1201_v1  ;;  %v1202_v9 = vmul.f32 0.70710677, %v1191_v6  ;;  %v1152_v13 = vpop.f32.mrf.mxu0  ;;  %v1198_v35 = vmul.f32 0.5, %v1191_v6 }
 0x47e   :  { %1609 = verf.f32 %v1200_v47  ;;  %v1193_v17 = vpop.f32.mrf.mxu1 }
 0x47f   :  { %1611 = verf.f32 %v1202_v9 }
 0x489   :  { %v1606_v52 = vpop.eup %1605 }
 0x48a   :  { %v1608_v21 = vpop.eup %1607  ;;  %v1207_v23 = vadd.f32 1.0, %v1606_v52 }
 0x48b   :  { %v1610_v24 = vpop.eup %1609  ;;  %v1209_v58 = vadd.f32 1.0, %v1608_v21 }
 0x48c   :  { %v1612_v25 = vpop.eup %1611  ;;  %v1211_v12 = vmul.f32 %v1207_v23, %v1195_v7  ;;  %v1208_v31 = vadd.f32 1.0, %v1610_v24 }
 0x48d   :  { %v1213_v34 = vmul.f32 %v1209_v58, %v1197_v37  ;;  %v1210_v54 = vadd.f32 1.0, %v1612_v25 }
 0x48e   :  { %v1221_v60 = vmul.f32 %v1219_v33, %v1211_v12  ;;  %v1212_v5 = vmul.f32 %v1208_v31, %v1196_v27  ;;  %v1653_v31 = vmov 1966171168  }
 0x48f   :  { %v1223_v11 = vmul.f32 %v1219_v33, %v1213_v34  ;;  %v1214_v38 = vmul.f32 %v1210_v54, %v1198_v35 }
 0x490   :  { %v1225_v43 = vrot.slane %v1221_v60, 4  ;;  %v1222_v44 = vmul.f32 %v1219_v33, %v1212_v5 }
 0x491   :  { %v1237_v18 = vrot.slane %v1223_v11, 4  ;;  %v1224_v19 = vmul.f32 %v1219_v33, %v1214_v38  ;;  %v1311_v33 = vunpack.c.l.s4 %v1653_v31 }
 0x492   :  { %v1226_v45 = vadd.f32 %v1225_v43, %v1221_v60  ;;  %v1231_v0 = vrot.slane %v1222_v44, 4 }
 0x493   :  { %v1238_v39 = vadd.f32 %v1237_v18, %v1223_v11  ;;  %v1243_v62 = vrot.slane %v1224_v19, 4  ;;  %v1312_v11 = vunpack.c.0.s8 %v1311_v33 }
 0x494   :  { %v1227_v42 = vrot.slane %v1226_v45, 2  ;;  %v1232_v48 = vadd.f32 %v1231_v0, %v1222_v44 }
 0x495   :  { %v1239_v63 = vrot.slane %v1238_v39, 2  ;;  %v1244_v30 = vadd.f32 %v1243_v62, %v1224_v19 }
 0x496   :  { %v1228_v22 = vadd.f32 %v1227_v42, %v1226_v45  ;;  %v1233_v40 = vrot.slane %v1232_v48, 2 }
 0x497   :  { %v1240_v50 = vadd.f32 %v1239_v63, %v1238_v39  ;;  %v1245_v26 = vrot.slane %v1244_v30, 2 }
 0x498   :  { %v1229_v53 = vrot.slane %v1228_v22, 1  ;;  %v1234_v55 = vadd.f32 %v1233_v40, %v1232_v48  ;;  %v1315_v48 = vsub.s32 %v1312_v11, %v2161_v36 }
 0x499   :  { %v1241_v56 = vrot.slane %v1240_v50, 1  ;;  %v1246_v57 = vadd.f32 %v1245_v26, %v1244_v30 }
 0x49a   :  { %v1230_v61 = vadd.f32 %v1229_v53, %v1228_v22  ;;  %v1235_v2 = vrot.slane %v1234_v55, 1 }
 0x49b   :  { %v1242_v3 = vadd.f32 %v1241_v56, %v1240_v50  ;;  %v1247_v8 = vrot.slane %v1246_v57, 1 }
 0x49c   :  { %v2164_v16 = vadd.f32 %v1258_v59, %v1230_v61  ;;  %v1236_v46 = vadd.f32 %v1235_v2, %v1234_v55 }
 0x49d   :  { %v2166_v10 = vadd.f32 %v1258_v59, %v1242_v3  ;;  %v1248_v28 = vadd.f32 %v1247_v8, %v1246_v57 }
 0x49e   :  { %v1267_v29 = vand.u32 2147483647, %v2164_v16  ;;  %v1260_v51 = vadd.f32 %v1258_v59, %v1236_v46  ;;  %v1263_v54 = vmax.f32 %v2164_v16, 0.0 }
 0x49f   :  { %v1269_v14 = vand.u32 2147483647, %v2166_v10  ;;  %v1262_v15 = vadd.f32 %v1258_v59, %v1248_v28  ;;  %v1265_v38 = vmax.f32 %v2166_v10, 0.0 }
 0x4a0   :  { %v1271_v1 = vsub.f32 0.0, %v1267_v29  ;;  %v1268_v6 = vand.u32 2147483647, %v1260_v51  ;;  %v1264_v19 = vmax.f32 %v1260_v51, 0.0 }
 0x4a1   :  { %v1273_v20 = vsub.f32 0.0, %v1269_v14  ;;  %v1270_v47 = vand.u32 2147483647, %v1262_v15  ;;  %v1266_v39 = vmax.f32 %v1262_v15, 0.0 }
 0x4a2   :  { %v1275_v4 = vmul.f32 1.442695, %v1271_v1  ;;  %v1272_v9 = vsub.f32 0.0, %v1268_v6 }
 0x4a3   :  { %v1279_v13 = vmul.f32 1.442695, %v1273_v20  ;;  %v1274_v17 = vsub.f32 0.0, %v1270_v47 }
 0x4a4   :  { %1613 = vpow2.f32 %v1275_v4  ;;  %v1277_v52 = vmul.f32 1.442695, %v1272_v9 }
 0x4a5   :  { %1615 = vpow2.f32 %v1279_v13  ;;  %v1281_v21 = vmul.f32 1.442695, %v1274_v17 }
 0x4a6   :  { %1617 = vpow2.f32 %v1277_v52 }
 0x4a7   :  { %1619 = vpow2.f32 %v1281_v21 }
 0x4b1   :  { %v1614_v7 = vpop.eup %1613 }
 0x4b2   :  { %v1616_v23 = vpop.eup %1615  ;;  %v1283_v24 = vadd.f32 1.0, %v1614_v7 }
 0x4b3   :  { %v1618_v37 = vpop.eup %1617  ;;  %v1285_v58 = vadd.f32 1.0, %v1616_v23 }
 0x4b4   :  { %v1620_v25 = vpop.eup %1619  ;;  %1621 = vlog2.f32 %v1283_v24  ;;  %v1284_v12 = vadd.f32 1.0, %v1618_v37 }
 0x4b5   :  { %1623 = vlog2.f32 %v1285_v58  ;;  %v1286_v27 = vadd.f32 1.0, %v1620_v25 }
 0x4b6   :  { %1625 = vlog2.f32 %v1284_v12 }
 0x4b7   :  { %1627 = vlog2.f32 %v1286_v27 }
 0x4c1   :  { %v1622_v34 = vpop.eup %1621 }
 0x4c2   :  { %v1624_v35 = vpop.eup %1623  ;;  %v1288_v60 = vmul.f32 0.6931472, %v1622_v34 }
 0x4c3   :  { %v1626_v5 = vpop.eup %1625  ;;  %v1292_v43 = vmul.f32 0.6931472, %v1624_v35 }
 0x4c4   :  { %v1628_v44 = vpop.eup %1627  ;;  %v1295_v18 = vadd.f32 %v1288_v60, %v1263_v54  ;;  %v1290_v45 = vmul.f32 0.6931472, %v1626_v5 }
 0x4c5   :  { %v1297_v0 = vadd.f32 %v1292_v43, %v1265_v38  ;;  %v1294_v62 = vmul.f32 0.6931472, %v1628_v44 }
 0x4c6   :  { %v1296_v42 = vadd.f32 %v1290_v45, %v1264_v19  ;;  %v1299_v30 = vsub.f32 0.0, %v1295_v18  ;;  %v1303_v32 = vsub.f32 %v2164_v16, %v1295_v18 }
 0x4c7   :  { %v1298_v63 = vadd.f32 %v1294_v62, %v1266_v39  ;;  %v1301_v49 = vsub.f32 0.0, %v1297_v0  ;;  %v1305_v50 = vsub.f32 %v2166_v10, %v1297_v0 }
 0x4c8   :  { %v1300_v22 = vsub.f32 0.0, %v1296_v42  ;;  %v1304_v40 = vsub.f32 %v1260_v51, %v1296_v42 }
 0x4c9   :  { %v1302_v26 = vsub.f32 0.0, %v1298_v63  ;;  %v1306_v53 = vsub.f32 %v1262_v15, %v1298_v63 }
 0x4ca   :  { %v1332_v55 = vcombine.low %v1303_v32, %v1304_v40  ;;  %v1309_v56 = vcombine.low %v1299_v30, %v1300_v22 }
 0x4cb   :  { %v1372_v57 = vcombine.low %v1305_v50, %v1306_v53  ;;  %v1352_v59 = vcombine.low %v1301_v49, %v1302_v26 }
 0x4cc   :  { %v1316_v61 = vrot.slane %v1309_v56, %v1315_v48  ;;  %v1339_v2 = vrot.slane %v1332_v55, %v1315_v48 }
 0x4cd   :  { %v1359_v36 = vrot.slane %v1352_v59, %v1315_v48  ;;  %v1379_v3 = vrot.slane %v1372_v57, %v1315_v48 }
 0x4ce   :  { %v1323_v8 = vrot.slane %v1316_v61, %v1315_v48  ;;  %v1346_v16 = vrot.slane %v1339_v2, %v1315_v48 }
 0x4cf   :  { %v1366_v46 = vrot.slane %v1359_v36, %v1315_v48  ;;  %v1386_v28 = vrot.slane %v1379_v3, %v1315_v48 }
 0x4d0   :  { %1329 = vst.msk [vmem:[#allocation3] ss:$2 sm:$0x3] %vm1327_vm3, %v1323_v8  ;;  %1349 = vst.msk [vmem:[#allocation3 + $0x1] ss:$2 sm:$0x3] %vm1327_vm3, %v1346_v16 }
 0x4d1   :  { %1369 = vst.msk [vmem:[#allocation3 + $0x4] ss:$2 sm:$0x3] %vm1327_vm3, %v1366_v46  ;;  %1389 = vst.msk [vmem:[#allocation3 + $0x5] ss:$2 sm:$0x3] %vm1327_vm3, %v1386_v28 }
 0x4d2   :  { %1640 = shalt.err (!%p1637_p4)
}
 0x4d3   :  { %s1655_s28 = smov 64   ;;  %s1656_s29 = smov 4  }
 0x4d4   :  { %1401 = dma.vmem_to_hbm [thread:$0]  %s1396_s26, 128, %s2190_s11, [#allocation4], %s1655_s28, %s1655_s28, %s1656_s29  }
 0x4d5   :  { %1649 = dma.done.wait [#allocation4], 128  }
 0x4d6   :  { %1650 = vsyncadd [#allocation4], 4294967168 }
 0x4d7   :  { %1405 = vsyncpa [#allocation4], 1 }

</bundles_post_ra>
